<compile_context>
chip_gen: v7x
topology: tpu7x:2x2x1
jax: 0.10.0
libtpu: 0.0.40
codegen_flags: <defaults>
</compile_context>

<pallas_src>
import jax
import jax.numpy as jnp
from jax.experimental import pallas as pl
from jax.experimental.pallas import tpu as pltpu

EPS = 1e-6
_ROW_TILE = 2048  # rows per grid step for large inputs (2048x384 fp32 ~ 3 MB/block)


def _round_up(x, m):
    return -(-x // m) * m


def _layernorm_kernel(x_ref, g_ref, b_ref, o_ref):
    # x_ref: (TR, C) tile in VMEM; g_ref/b_ref: (1, C) resident affine params.
    x = x_ref[...].astype(jnp.float32)
    c = x.shape[-1]
    # Single-pass stats: both lane reductions are independent -> XLU overlap,
    # and the centered-difference full-tile pass is eliminated.  The max(.,0)
    # clamp also keeps rsqrt finite on the never-stored padding rows of a
    # masked edge block.
    s1 = jnp.sum(x, axis=-1, keepdims=True)
    s2 = jnp.sum(x * x, axis=-1, keepdims=True)
    inv_c = jnp.float32(1.0 / c)
    mean = s1 * inv_c
    var = jnp.maximum(s2 * inv_c - mean * mean, 0.0)
    inv = jax.lax.rsqrt(var + EPS)
    y = (x - mean) * inv
    y = y * g_ref[...].astype(jnp.float32) + b_ref[...].astype(jnp.float32)
    o_ref[...] = y.astype(o_ref.dtype)


def layernorm_lastdim(x, gamma, beta):
    """LayerNorm over the last axis of x (any leading shape), eps=1e-6, affine."""
    orig_shape = x.shape
    C = orig_shape[-1]
    x2d = x.reshape(-1, C)
    R = x2d.shape[0]

    # Sublane packing: 16 rows/vreg for 2-byte dtypes (bf16/fp16), 8 for fp32.
    sub = 16 if jnp.dtype(x.dtype).itemsize == 2 else 8

    if R <= 256:
        # Single full-extent block: exempt from the (8,128) divisibility rule,
        # no masking needed, one grid step (ConvNeXt 14x14 path lands here).
        TR = R
    elif R <= _ROW_TILE:
        # Split mid-size inputs into >=2 row blocks so v7x megacore sharding
        # (dimension_semantics="parallel") keeps both TensorCores busy.
        TR = _round_up(pl.cdiv(R, 2), sub)
    else:
        TR = _ROW_TILE  # multiple of both 8 and 16

    grid = (pl.cdiv(R, TR),)

    g2d = gamma.reshape(1, C)
    b2d = beta.reshape(1, C)

    out = pl.pallas_call(
        _layernorm_kernel,
        out_shape=jax.ShapeDtypeStruct((R, C), x.dtype),
        grid_spec=pl.GridSpec(
            grid=grid,
            in_specs=[
                pl.BlockSpec((TR, C), lambda i: (i, 0)),   # row tile of x
                pl.BlockSpec((1, C), lambda i: (0, 0)),    # gamma stays resident
                pl.BlockSpec((1, C), lambda i: (0, 0)),    # beta stays resident
            ],
            out_specs=pl.BlockSpec((TR, C), lambda i: (i, 0)),
        ),
        compiler_params=pltpu.CompilerParams(
            dimension_semantics=("parallel",),
            # TR=2048 fp32 needs ~12 MB double-buffered; be explicit so v5e's
            # ~16 MiB default scoped budget is never the limiter.
            vmem_limit_bytes=32 * 1024 * 1024,
        ),
    )(x2d, g2d, b2d)

    return out.reshape(orig_shape)


class M:
    """JAX/Pallas equivalent of the PyTorch module M (LayerNorm((384,), eps=1e-6, affine))."""

    def __init__(self, dim=384):
        # PyTorch LayerNorm default init: weight=1, bias=0 (deterministic).
        self.gamma = jnp.ones((dim,), dtype=jnp.float32)
        self.beta = jnp.zeros((dim,), dtype=jnp.float32)

    def __call__(self, x109):
        return layernorm_lastdim(x109, self.gamma, self.beta)


if __name__ == "__main__":
    key = jax.random.PRNGKey(0)
    # Shape the PyTorch module implies: [1, 14, 14, 384] (channels-last).
    x109 = jax.random.normal(key, (1, 14, 14, 384), dtype=jnp.float32)

    model = M(dim=384)
    out = model(x109)
    out = jax.block_until_ready(out)

    # Sanity check against a pure-JAX reference (two-pass centered form).
    mean = jnp.mean(x109, axis=-1, keepdims=True)
    var = jnp.mean((x109 - mean) ** 2, axis=-1, keepdims=True)
    ref = (x109 - mean) / jnp.sqrt(var + EPS) * model.gamma + model.beta
    assert out.shape == (1, 14, 14, 384)
    assert jnp.max(jnp.abs(out - ref)) < 1e-4

    print("KERNEL_OK")
</pallas_src>

<mosaic_0001>
module attributes {stable_mosaic.version = 11 : i64} {
  func.func @_layernorm_kernel(%arg0: i32, %arg1: memref<196x384xf32, #tpu.memory_space<vmem>>, %arg2: memref<1x384xf32, #tpu.memory_space<vmem>>, %arg3: memref<1x384xf32, #tpu.memory_space<vmem>>, %arg4: memref<196x384xf32, #tpu.memory_space<vmem>>) attributes {dimension_semantics = [#tpu.dimension_semantics<parallel>], iteration_bounds = array<i64: 1>, scalar_prefetch = 0 : i64, scratch_operands = 0 : i64, tpu.core_type = #tpu.core_type<tc>, window_params = [{transform_indices = @transform_0, window_bounds = array<i64: 196, 384>}, {pipeline_mode = #tpu.pipeline_mode<synchronous>, transform_indices = @transform_1, window_bounds = array<i64: 1, 384>}, {pipeline_mode = #tpu.pipeline_mode<synchronous>, transform_indices = @transform_2, window_bounds = array<i64: 1, 384>}, {transform_indices = @transform_3, window_bounds = array<i64: 196, 384>}]} {
    %c0 = arith.constant 0 : index
    %c0_0 = arith.constant 0 : index
    %0 = vector.load %arg1[%c0, %c0_0] : memref<196x384xf32, #tpu.memory_space<vmem>>, vector<196x384xf32>
    %cst = arith.constant dense<0.000000e+00> : vector<196xf32>
    %1 = vector.multi_reduction <add>, %0, %cst [1] : vector<196x384xf32> to vector<196xf32>
    %2 = vector.shape_cast %1 : vector<196xf32> to vector<196x1xf32>
    %3 = arith.mulf %0, %0 : vector<196x384xf32>
    %cst_1 = arith.constant dense<0.000000e+00> : vector<196xf32>
    %4 = vector.multi_reduction <add>, %3, %cst_1 [1] : vector<196x384xf32> to vector<196xf32>
    %5 = vector.shape_cast %4 : vector<196xf32> to vector<196x1xf32>
    %cst_2 = arith.constant 0.00260416674 : f32
    %6 = vector.broadcast %cst_2 : f32 to vector<196x1xf32>
    %7 = arith.mulf %2, %6 : vector<196x1xf32>
    %cst_3 = arith.constant 0.00260416674 : f32
    %8 = vector.broadcast %cst_3 : f32 to vector<196x1xf32>
    %9 = arith.mulf %5, %8 : vector<196x1xf32>
    %10 = arith.mulf %7, %7 : vector<196x1xf32>
    %11 = arith.subf %9, %10 : vector<196x1xf32>
    %cst_4 = arith.constant 0.000000e+00 : f32
    %12 = vector.broadcast %cst_4 : f32 to vector<196x1xf32>
    %13 = arith.maximumf %11, %12 : vector<196x1xf32>
    %cst_5 = arith.constant 9.99999997E-7 : f32
    %14 = vector.broadcast %cst_5 : f32 to vector<196x1xf32>
    %15 = arith.addf %13, %14 : vector<196x1xf32>
    %16 = math.rsqrt %15 : vector<196x1xf32>
    %17 = vector.broadcast %7 : vector<196x1xf32> to vector<196x384xf32>
    %18 = arith.subf %0, %17 : vector<196x384xf32>
    %19 = vector.broadcast %16 : vector<196x1xf32> to vector<196x384xf32>
    %20 = arith.mulf %18, %19 : vector<196x384xf32>
    %c0_6 = arith.constant 0 : index
    %c0_7 = arith.constant 0 : index
    %21 = vector.load %arg2[%c0_6, %c0_7] : memref<1x384xf32, #tpu.memory_space<vmem>>, vector<1x384xf32>
    %22 = vector.broadcast %21 : vector<1x384xf32> to vector<196x384xf32>
    %23 = arith.mulf %20, %22 : vector<196x384xf32>
    %c0_8 = arith.constant 0 : index
    %c0_9 = arith.constant 0 : index
    %24 = vector.load %arg3[%c0_8, %c0_9] : memref<1x384xf32, #tpu.memory_space<vmem>>, vector<1x384xf32>
    %25 = vector.broadcast %24 : vector<1x384xf32> to vector<196x384xf32>
    %26 = arith.addf %23, %25 : vector<196x384xf32>
    %c0_10 = arith.constant 0 : index
    %c0_11 = arith.constant 0 : index
    %27 = vector.load %arg4[%c0_10, %c0_11] : memref<196x384xf32, #tpu.memory_space<vmem>>, vector<196x384xf32>
    tpu.vector_store %arg4[%c0_10, %c0_11], %26 {strides = array<i32>} : memref<196x384xf32, #tpu.memory_space<vmem>>, vector<196x384xf32>,
    return
  }
  func.func @transform_0(%arg0: i32) -> (i32, i32) {
    %c0_i32 = arith.constant 0 : i32
    %c0_i32_0 = arith.constant 0 : i32
    return %arg0, %c0_i32 : i32, i32
  }
  func.func @transform_1(%arg0: i32) -> (i32, i32) {
    %c0_i32 = arith.constant 0 : i32
    %c0_i32_0 = arith.constant 0 : i32
    %c0_i32_1 = arith.constant 0 : i32
    return %c0_i32, %c0_i32_0 : i32, i32
  }
  func.func @transform_2(%arg0: i32) -> (i32, i32) {
    %c0_i32 = arith.constant 0 : i32
    %c0_i32_0 = arith.constant 0 : i32
    %c0_i32_1 = arith.constant 0 : i32
    return %c0_i32, %c0_i32_0 : i32, i32
  }
  func.func @transform_3(%arg0: i32) -> (i32, i32) {
    %c0_i32 = arith.constant 0 : i32
    %c0_i32_0 = arith.constant 0 : i32
    return %arg0, %c0_i32 : i32, i32
  }
}

</mosaic_0001>

<bundles_post_ra>
// kernel: tpu_custom_call.1
= control target key start
LH: loop header
LB: loop body
LE: loop exit
PB: predicated region body
PF: predicated region fallthrough
CT: control target
= control target key end

     0   :  { %8 = vsyncpa [#allocation3], 0  ;;  %s2260_s0 = inlined_call_operand.hbm [shape: f32[196,384], index: 0, kind: input, shape index: {}]   ;;  %s2261_s1 = inlined_call_operand.vmem [shape: f32[1,384], index: 1, kind: input, shape index: {}]   ;;  %s2262_s2 = inlined_call_operand.vmem [shape: f32[1,384], index: 2, kind: input, shape index: {}]   ;;  %s2263_s3 = inlined_call_operand.hbm [shape: f32[196,384], index: 3, kind: output, shape index: {}]  }
   0x1   :  { %9 = vsyncpa [#allocation4], 0  ;;  %s1107_s12 = smov [#allocation2]   ;;  %s1059_s16 = scalar_lea.hbm %s2260_s0, 9600 }
   0x2   :  { %s15_s13 = sshll.u32 %s1107_s12, 4  ;;  %p1060_p0 = scmp.ne.s32.totalorder %s2260_s0, %s1059_s16  ;;  %s16_s13 = int_to_ptr.vmem [resolvable:$true] %s15_s13 }
   0x3   :  { %p1063_p1 = scmp.lt.u32.totalorder %s1059_s16, %s2260_s0 }
   0x5   :  { %p1065_p2 = pnand %p1063_p1, %p1060_p0 }
   0x7   :  { %1068 = shalt.err (!%p1065_p2)
}
   0x8   :  { %s1069_s21 = scalar_lea.vmem %s16_s13, 9600  ;;  %p1074_p4 = scmp.lt.s32.totalorder %s16_s13, %s16_s13 }
   0x9   :  { %p1070_p3 = scmp.ne.s32.totalorder %s16_s13, %s1069_s21  ;;  %p1075_p5 = scmp.lt.s32.totalorder %s1069_s21, %s1069_s21 }
   0xb   :  { %p1076_p6 = por %p1075_p5, %p1074_p4 }
   0xd   :  { %p1077_p7 = pnand %p1076_p6, %p1070_p3 }
   0xf   :  { %1080 = shalt.err (!%p1077_p7)
}
  0x10   :  { %s1108_s22 = smov 384   ;;  %s1109_s23 = smov 24  }
  0x11   :  { %21 = dma.hbm_to_vmem [thread:$0]  %s2260_s0, 9600, %s16_s13, [#allocation3], %s1108_s22, %s1108_s22, %s1109_s23  }
  0x12   :  { %1103 = dma.done.wait [#allocation3], 9600  }
  0x13   :  { %1104 = vsyncadd [#allocation3], 4294957696  ;;  %v1146_v0 = vld [vmem:[#allocation2 + $0x30] sm:$0xff]  ;;  %v1148_v1 = vld [vmem:[#allocation2 + $0x38] sm:$0xff]  ;;  %vm200_vm0 = vcmask 1043456  }
  0x14   :  { %2383 = vst [vmem:[#allocation8_spill] sm:$0xff] %v1146_v0  ;;  %2384 = vst [vmem:[#allocation9_spill] sm:$0xff] %v1148_v1  ;;  %v1150_v2 = vld [vmem:[#allocation2 + $0x40] sm:$0xff]  ;;  %v112_v3 = vadd.f32 %v1148_v1, %v1146_v0  ;;  %v1156_v5 = vld [vmem:[#allocation2 + $0x8] sm:$0xff] }
  0x15   :  { %2385 = vst [vmem:[#allocation10_spill] sm:$0xff] %v1150_v2  ;;  %v1154_v4 = vld [vmem:[#allocation2] sm:$0xff]  ;;  %2387 = vst [vmem:[#allocation12_spill] sm:$0xff] %v1156_v5  ;;  %v1158_v6 = vld [vmem:[#allocation2 + $0x10] sm:$0xff] }
  0x16   :  { %2386 = vst [vmem:[#allocation11_spill] sm:$0xff] %v1154_v4  ;;  %2388 = vst [vmem:[#allocation13_spill] sm:$0xff] %v1158_v6  ;;  %v104_v7 = vadd.f32 %v1156_v5, %v1154_v4  ;;  %v1162_v8 = vld [vmem:[#allocation2 + $0x48] sm:$0xff]  ;;  %v1164_v9 = vld [vmem:[#allocation2 + $0x50] sm:$0xff]  ;;  %v113_v11 = vadd.f32 %v112_v3, %v1150_v2 }
  0x17   :  { %2389 = vst [vmem:[#allocation14_spill] sm:$0xff] %v1162_v8  ;;  %2390 = vst [vmem:[#allocation15_spill] sm:$0xff] %v1164_v9  ;;  %v1166_v10 = vld [vmem:[#allocation2 + $0x58] sm:$0xff]  ;;  %v116_v12 = vadd.f32 %v1164_v9, %v1162_v8  ;;  %v1173_v14 = vld [vmem:[#allocation2 + $0x20] sm:$0xff] }
  0x18   :  { %2391 = vst [vmem:[#allocation16_spill] sm:$0xff] %v1166_v10  ;;  %v1171_v13 = vld [vmem:[#allocation2 + $0x18] sm:$0xff]  ;;  %2393 = vst [vmem:[#allocation18_spill] sm:$0xff] %v1173_v14  ;;  %v1175_v15 = vld [vmem:[#allocation2 + $0x28] sm:$0xff]  ;;  %v105_v16 = vadd.f32 %v104_v7, %v1158_v6  ;;  %114 = vadd.xlane.f32.xlu1 %v113_v11 }
  0x19   :  { %2392 = vst [vmem:[#allocation17_spill] sm:$0xff] %v1171_v13  ;;  %v108_v17 = vadd.f32 %v1173_v14, %v1171_v13  ;;  %v1180_v18 = vld [vmem:[#allocation2 + $0x78] sm:$0xff]  ;;  %v1182_v19 = vld [vmem:[#allocation2 + $0x80] sm:$0xff]  ;;  %v117_v20 = vadd.f32 %v116_v12, %v1166_v10  ;;  %v1189_v23 = vld [vmem:[#allocation2 + $0x68] sm:$0xff] }
  0x1a   :  { %2394 = vst [vmem:[#allocation19_spill] sm:$0xff] %v1180_v18  ;;  %2395 = vst [vmem:[#allocation20_spill] sm:$0xff] %v1182_v19  ;;  %v124_v21 = vadd.f32 %v1182_v19, %v1180_v18  ;;  %v1187_v22 = vld [vmem:[#allocation2 + $0x60] sm:$0xff]  ;;  %106 = vadd.xlane.f32.xlu0 %v105_v16  ;;  %v1192_v25 = vld [vmem:[#allocation2 + $0x88] sm:$0xff] }
  0x1b   :  { %v109_v24 = vadd.f32 %v108_v17, %v1175_v15  ;;  %2396 = vst [vmem:[#allocation21_spill] sm:$0xff] %v1192_v25  ;;  %v120_v26 = vadd.f32 %v1189_v23, %v1187_v22  ;;  %v1196_v27 = vld [vmem:[#allocation2 + $0xa8] sm:$0xff]  ;;  %v1198_v28 = vld [vmem:[#allocation2 + $0xb0] sm:$0xff]  ;;  %v1204_v31 = vld [vmem:[#allocation2 + $0x98] sm:$0xff] }
  0x1c   :  { %2397 = vst [vmem:[#allocation22_spill] sm:$0xff] %v1196_v27  ;;  %2398 = vst [vmem:[#allocation23_spill] sm:$0xff] %v1198_v28  ;;  %v1200_v29 = vld [vmem:[#allocation2 + $0x70] sm:$0xff]  ;;  %118 = vadd.xlane.f32.xlu1 %v117_v20  ;;  %v125_v32 = vadd.f32 %v124_v21, %v1192_v25  ;;  %v132_v33 = vadd.f32 %v1198_v28, %v1196_v27  ;;  %v1210_v35 = vld [vmem:[#allocation2 + $0xb8] sm:$0xff] }
  0x1d   :  { %v1202_v30 = vld [vmem:[#allocation2 + $0x90] sm:$0xff]  ;;  %v121_v34 = vadd.f32 %v120_v26, %v1200_v29  ;;  %2399 = vst [vmem:[#allocation24_spill] sm:$0xff] %v1210_v35  ;;  %v1214_v37 = vld [vmem:[#allocation2 + $0xd8] sm:$0xff]  ;;  %v1216_v38 = vld [vmem:[#allocation2 + $0xe0] sm:$0xff] }
  0x1e   :  { %110 = vadd.xlane.f32.xlu0 %v109_v24  ;;  %v128_v36 = vadd.f32 %v1204_v31, %v1202_v30  ;;  %2400 = vst [vmem:[#allocation25_spill] sm:$0xff] %v1214_v37  ;;  %2401 = vst [vmem:[#allocation26_spill] sm:$0xff] %v1216_v38  ;;  %v1218_v39 = vld [vmem:[#allocation2 + $0xa0] sm:$0xff]  ;;  %v1222_v41 = vld [vmem:[#allocation2 + $0xc8] sm:$0xff]  ;;  %v133_v42 = vadd.f32 %v132_v33, %v1210_v35  ;;  %v140_v43 = vadd.f32 %v1216_v38, %v1214_v37 }
  0x1f   :  { %v1220_v40 = vld [vmem:[#allocation2 + $0xc0] sm:$0xff]  ;;  %v1228_v45 = vld [vmem:[#allocation2 + $0xe8] sm:$0xff]  ;;  %v1234_v48 = vld [vmem:[#allocation2 + $0x110] sm:$0xff] }
  0x20   :  { %2402 = vst [vmem:[#allocation27_spill] sm:$0xff] %v1220_v40  ;;  %126 = vadd.xlane.f32.xlu1 %v125_v32  ;;  %v129_v44 = vadd.f32 %v128_v36, %v1218_v39  ;;  %2403 = vst [vmem:[#allocation28_spill] sm:$0xff] %v1228_v45  ;;  %v136_v46 = vadd.f32 %v1222_v41, %v1220_v40  ;;  %v1232_v47 = vld [vmem:[#allocation2 + $0x108] sm:$0xff]  ;;  %v1236_v49 = vld [vmem:[#allocation2 + $0xd0] sm:$0xff]  ;;  %v141_v52 = vadd.f32 %v140_v43, %v1228_v45 }
  0x21   :  { %2404 = vst [vmem:[#allocation29_spill] sm:$0xff] %v1232_v47  ;;  %2405 = vst [vmem:[#allocation30_spill] sm:$0xff] %v1234_v48  ;;  %v1238_v50 = vld [vmem:[#allocation2 + $0xf0] sm:$0xff]  ;;  %v1240_v51 = vld [vmem:[#allocation2 + $0xf8] sm:$0xff]  ;;  %v148_v53 = vadd.f32 %v1234_v48, %v1232_v47 }
  0x22   :  { %122 = vadd.xlane.f32.xlu0 %v121_v34  ;;  %2406 = vst [vmem:[#allocation31_spill] sm:$0xff] %v1238_v50  ;;  %2407 = vst [vmem:[#allocation32_spill] sm:$0xff] %v1240_v51  ;;  %v137_v54 = vadd.f32 %v136_v46, %v1236_v49  ;;  %v1246_v55 = vld [vmem:[#allocation2 + $0x118] sm:$0xff]  ;;  %v144_v56 = vadd.f32 %v1240_v51, %v1238_v50  ;;  %v1252_v58 = vld [vmem:[#allocation2 + $0x140] sm:$0xff] }
  0x23   :  { %2408 = vst [vmem:[#allocation33_spill] sm:$0xff] %v1246_v55  ;;  %v1250_v57 = vld [vmem:[#allocation2 + $0x138] sm:$0xff]  ;;  %2410 = vst [vmem:[#allocation35_spill] sm:$0xff] %v1252_v58  ;;  %v1254_v59 = vld [vmem:[#allocation2 + $0x100] sm:$0xff]  ;;  %v149_v62 = vadd.f32 %v148_v53, %v1246_v55 }
  0x24   :  { %134 = vadd.xlane.f32.xlu1 %v133_v42  ;;  %2409 = vst [vmem:[#allocation34_spill] sm:$0xff] %v1250_v57  ;;  %2411 = vst [vmem:[#allocation36_spill] sm:$0xff] %v1254_v59  ;;  %v1256_v60 = vld [vmem:[#allocation2 + $0x120] sm:$0xff]  ;;  %v1258_v61 = vld [vmem:[#allocation2 + $0x128] sm:$0xff]  ;;  %v156_v63 = vadd.f32 %v1252_v58, %v1250_v57  ;;  %v145_v3 = vadd.f32 %v144_v56, %v1254_v59 }
  0x25   :  { %2412 = vst [vmem:[#allocation37_spill] sm:$0xff] %v1256_v60  ;;  %2413 = vst [vmem:[#allocation38_spill] sm:$0xff] %v1258_v61  ;;  %v1264_v7 = vld [vmem:[#allocation2 + $0x148] sm:$0xff]  ;;  %v152_v11 = vadd.f32 %v1258_v61, %v1256_v60  ;;  %v1270_v16 = vld [vmem:[#allocation2 + $0x170] sm:$0xff] }
  0x26   :  { %130 = vadd.xlane.f32.xlu0 %v129_v44  ;;  %2414 = vst [vmem:[#allocation39_spill] sm:$0xff] %v1264_v7  ;;  %v1268_v12 = vld [vmem:[#allocation2 + $0x168] sm:$0xff]  ;;  %2416 = vst [vmem:[#allocation41_spill] sm:$0xff] %v1270_v16  ;;  %v1272_v17 = vld [vmem:[#allocation2 + $0x130] sm:$0xff]  ;;  %v157_v24 = vadd.f32 %v156_v63, %v1264_v7 }
  0x27   :  { %2415 = vst [vmem:[#allocation40_spill] sm:$0xff] %v1268_v12  ;;  %2417 = vst [vmem:[#allocation42_spill] sm:$0xff] %v1272_v17  ;;  %v1274_v20 = vld [vmem:[#allocation2 + $0x150] sm:$0xff]  ;;  %v1276_v21 = vld [vmem:[#allocation2 + $0x158] sm:$0xff]  ;;  %v164_v26 = vadd.f32 %v1270_v16, %v1268_v12  ;;  %v153_v32 = vadd.f32 %v152_v11, %v1272_v17 }
  0x28   :  { %142 = vadd.xlane.f32.xlu1 %v141_v52  ;;  %2418 = vst [vmem:[#allocation43_spill] sm:$0xff] %v1274_v20  ;;  %2419 = vst [vmem:[#allocation44_spill] sm:$0xff] %v1276_v21  ;;  %v1282_v33 = vld [vmem:[#allocation2 + $0x178] sm:$0xff]  ;;  %v160_v34 = vadd.f32 %v1276_v21, %v1274_v20  ;;  %v1288_v42 = vld [vmem:[#allocation2 + $0x1a0] sm:$0xff] }
  0x29   :  { %2420 = vst [vmem:[#allocation45_spill] sm:$0xff] %v1282_v33  ;;  %v1286_v36 = vld [vmem:[#allocation2 + $0x198] sm:$0xff]  ;;  %2422 = vst [vmem:[#allocation47_spill] sm:$0xff] %v1288_v42  ;;  %v1290_v43 = vld [vmem:[#allocation2 + $0x160] sm:$0xff]  ;;  %v165_v52 = vadd.f32 %v164_v26, %v1282_v33 }
  0x2a   :  { %138 = vadd.xlane.f32.xlu0 %v137_v54  ;;  %2421 = vst [vmem:[#allocation46_spill] sm:$0xff] %v1286_v36  ;;  %2423 = vst [vmem:[#allocation48_spill] sm:$0xff] %v1290_v43  ;;  %v1292_v44 = vld [vmem:[#allocation2 + $0x180] sm:$0xff]  ;;  %v1294_v46 = vld [vmem:[#allocation2 + $0x188] sm:$0xff]  ;;  %v172_v53 = vadd.f32 %v1288_v42, %v1286_v36  ;;  %v161_v54 = vadd.f32 %v160_v34, %v1290_v43 }
  0x2b   :  { %2424 = vst [vmem:[#allocation49_spill] sm:$0xff] %v1292_v44  ;;  %2425 = vst [vmem:[#allocation50_spill] sm:$0xff] %v1294_v46  ;;  %v1300_v56 = vld [vmem:[#allocation2 + $0x1a8] sm:$0xff]  ;;  %v1308_v11 = vld [vmem:[#allocation2 + $0x190] sm:$0xff] }
  0x2c   :  { %150 = vadd.xlane.f32.xlu1 %v149_v62  ;;  %2426 = vst [vmem:[#allocation51_spill] sm:$0xff] %v1300_v56  ;;  %v168_v62 = vadd.f32 %v1294_v46, %v1292_v44  ;;  %v1304_v63 = vld [vmem:[#allocation2 + $0x1c8] sm:$0xff]  ;;  %2429 = vst [vmem:[#allocation54_spill] sm:$0xff] %v1308_v11  ;;  %v1312_v26 = vld [vmem:[#allocation2 + $0x1b8] sm:$0xff] }
  0x2d   :  { %2427 = vst [vmem:[#allocation52_spill] sm:$0xff] %v1304_v63  ;;  %2431 = vst [vmem:[#allocation56_spill] sm:$0xff] %v1312_v26  ;;  %v1318_v36 = vld [vmem:[#allocation2 + $0x1d8] sm:$0xff]  ;;  %v1324_v12 = vld [vmem:[#allocation2 + $0x200] sm:$0xff] }
  0x2e   :  { %146 = vadd.xlane.f32.xlu0 %v145_v3  ;;  %v1306_v3 = vld [vmem:[#allocation2 + $0x1d0] sm:$0xff]  ;;  %v169_v42 = vadd.f32 %v168_v62, %v1308_v11  ;;  %2432 = vst [vmem:[#allocation57_spill] sm:$0xff] %v1318_v36  ;;  %v1322_v16 = vld [vmem:[#allocation2 + $0x1f8] sm:$0xff]  ;;  %2434 = vst [vmem:[#allocation59_spill] sm:$0xff] %v1324_v12 }
  0x2f   :  { %2428 = vst [vmem:[#allocation53_spill] sm:$0xff] %v1306_v3  ;;  %v180_v34 = vadd.f32 %v1306_v3, %v1304_v63  ;;  %2433 = vst [vmem:[#allocation58_spill] sm:$0xff] %v1322_v16  ;;  %v1326_v46 = vld [vmem:[#allocation2 + $0x1c0] sm:$0xff]  ;;  %v188_v62 = vadd.f32 %v1324_v12, %v1322_v16  ;;  %v1336_v3 = vld [vmem:[#allocation2 + $0x208] sm:$0xff] }
  0x30   :  { %158 = vadd.xlane.f32.xlu1 %v157_v24  ;;  %v1310_v24 = vld [vmem:[#allocation2 + $0x1b0] sm:$0xff]  ;;  %2435 = vst [vmem:[#allocation60_spill] sm:$0xff] %v1326_v46  ;;  %2438 = vst [vmem:[#allocation63_spill] sm:$0xff] %v1336_v3  ;;  %v1340_v11 = vld [vmem:[#allocation2 + $0x228] sm:$0xff] }
  0x31   :  { %2430 = vst [vmem:[#allocation55_spill] sm:$0xff] %v1310_v24  ;;  %v176_v33 = vadd.f32 %v1312_v26, %v1310_v24  ;;  %2439 = vst [vmem:[#allocation64_spill] sm:$0xff] %v1340_v11  ;;  %v1342_v26 = vld [vmem:[#allocation2 + $0x230] sm:$0xff]  ;;  %v1354_v12 = vld [vmem:[#allocation2 + $0x240] sm:$0xf] }
  0x32   :  { %154 = vadd.xlane.f32.xlu0 %v153_v32  ;;  %v173_v32 = vadd.f32 %v172_v53, %v1300_v56  ;;  %v1330_v53 = vld [vmem:[#allocation2 + $0x1e8] sm:$0xff]  ;;  %2440 = vst [vmem:[#allocation65_spill] sm:$0xff] %v1342_v26  ;;  %v1344_v24 = vld [vmem:[#allocation2 + $0x1f0] sm:$0xff]  ;;  %2441 = vst [vmem:[#allocation66_spill] sm:$0xff] %v1354_v12  ;;  %v201_v44 = vsel %vm200_vm0, %v1354_v12, 0.0  ;;  %v211_v12 = vmul.f32 %v1171_v13, %v1171_v13 }
  0x33   :  { %2437 = vst [vmem:[#allocation62_spill] sm:$0xff] %v1330_v53  ;;  %v177_v56 = vadd.f32 %v176_v33, %v1326_v46  ;;  %v209_v33 = vmul.f32 %v1156_v5, %v1156_v5  ;;  %v1356_v16 = vld [vmem:[#allocation2 + $0x248] sm:$0xf]  ;;  %v1362_v46 = vld [vmem:[#allocation2 + $0x238] sm:$0xff]  ;;  %v1366_v5 = vld [vmem:[#allocation2 + $0x220] sm:$0xff] }
  0x34   :  { %166 = vadd.xlane.f32.xlu1 %v165_v52  ;;  %v1328_v52 = vld [vmem:[#allocation2 + $0x1e0] sm:$0xff]  ;;  %2442 = vst [vmem:[#allocation67_spill] sm:$0xff] %v1356_v16 }
  0x35   :  { %2436 = vst [vmem:[#allocation61_spill] sm:$0xff] %v1328_v52  ;;  %v184_v63 = vadd.f32 %v1330_v53, %v1328_v52  ;;  %v196_v53 = vadd.f32 %v1342_v26, %v1340_v11  ;;  %v215_v11 = vmul.f32 %v1148_v1, %v1148_v1  ;;  %v216_v1 = vmul.f32 %v1150_v2, %v1150_v2 }
  0x36   :  { %162 = vadd.xlane.f32.xlu0 %v161_v54  ;;  %v181_v54 = vadd.f32 %v180_v34, %v1318_v36  ;;  %v1348_v34 = vld [vmem:[#allocation2 + $0x218] sm:$0xff]  ;;  %v189_v36 = vadd.f32 %v188_v62, %v1336_v3  ;;  %v210_v62 = vmul.f32 %v1158_v6, %v1158_v6 }
  0x37   :  { %v185_v52 = vadd.f32 %v184_v63, %v1344_v24  ;;  %v214_v63 = vmul.f32 %v1146_v0, %v1146_v0  ;;  %v197_v3 = vadd.f32 %v196_v53, %v1362_v46  ;;  %v213_v53 = vmul.f32 %v1175_v15, %v1175_v15 }
  0x38   :  { %174 = vadd.xlane.f32.xlu1 %v173_v32  ;;  %v1346_v32 = vld [vmem:[#allocation2 + $0x210] sm:$0xff] }
  0x3a   :  { %170 = vadd.xlane.f32.xlu0 %v169_v42  ;;  %v208_v42 = vmul.f32 %v1154_v4, %v1154_v4  ;;  %v192_v4 = vadd.f32 %v1348_v34, %v1346_v32 }
  0x3c   :  { %182 = vadd.xlane.f32.xlu1 %v181_v54  ;;  %v202_v54 = vsel %vm200_vm0, %v1356_v16, 0.0  ;;  %v283_v26 = vadd.f32 %v209_v33, %v208_v42  ;;  %v212_v16 = vmul.f32 %v1173_v14, %v1173_v14  ;;  %v193_v42 = vadd.f32 %v192_v4, %v1366_v5 }
  0x3d   :  { %v203_v33 = vadd.f32 %v202_v54, %v201_v44  ;;  %v220_v14 = vmul.f32 %v1187_v22, %v1187_v22  ;;  %v221_v4 = vmul.f32 %v1189_v23, %v1189_v23  ;;  %v222_v54 = vmul.f32 %v1200_v29, %v1200_v29 }
  0x3e   :  { %178 = vadd.xlane.f32.xlu0 %v177_v56  ;;  %v1374_v56 = vld [vmem:[#allocation2 + $0x250] sm:$0xf]  ;;  %v284_v0 = vadd.f32 %v283_v26, %v210_v62  ;;  %v287_v13 = vadd.f32 %v212_v16, %v211_v12  ;;  %v217_v26 = vmul.f32 %v1162_v8, %v1162_v8  ;;  %v227_v12 = vmul.f32 %v1204_v31, %v1204_v31 }
  0x3f   :  { %v204_v6 = vsel %vm200_vm0, %v1374_v56, 0.0  ;;  %v299_v62 = vadd.f32 %v221_v4, %v220_v14  ;;  %v233_v14 = vmul.f32 %v1222_v41, %v1222_v41  ;;  %v230_v4 = vmul.f32 %v1198_v28, %v1198_v28 }
  0x40   :  { %190 = vadd.xlane.f32.xlu1 %v189_v36  ;;  %v291_v36 = vadd.f32 %v215_v11, %v214_v63  ;;  %v205_v44 = vadd.f32 %v204_v6, %v203_v33  ;;  %v288_v11 = vadd.f32 %v287_v13, %v213_v53  ;;  %v219_v6 = vmul.f32 %v1166_v10, %v1166_v10 }
  0x41   :  { %v224_v33 = vmul.f32 %v1182_v19, %v1182_v19  ;;  %v232_v13 = vmul.f32 %v1220_v40, %v1220_v40  ;;  %v229_v53 = vmul.f32 %v1196_v27, %v1196_v27 }
  0x42   :  { %186 = vadd.xlane.f32.xlu0 %v185_v52  ;;  %v218_v52 = vmul.f32 %v1164_v9, %v1164_v9  ;;  %v292_v16 = vadd.f32 %v291_v36, %v216_v1  ;;  %v300_v36 = vadd.f32 %v299_v62, %v222_v54  ;;  %v238_v62 = vmul.f32 %v1238_v50, %v1238_v50 }
  0x43   :  { %v315_v40 = vadd.f32 %v233_v14, %v232_v13  ;;  %v311_v54 = vadd.f32 %v230_v4, %v229_v53  ;;  %v240_v14 = vmul.f32 %v1254_v59, %v1254_v59  ;;  %v237_v53 = vmul.f32 %v1228_v45, %v1228_v45 }
  0x44   :  { %198 = vadd.xlane.f32.xlu1 %v197_v3  ;;  %v226_v3 = vmul.f32 %v1202_v30, %v1202_v30  ;;  %v295_v63 = vadd.f32 %v218_v52, %v217_v26  ;;  %v225_v26 = vmul.f32 %v1192_v25, %v1192_v25 }
  0x46   :  { %194 = vadd.xlane.f32.xlu0 %v193_v42  ;;  %v223_v42 = vmul.f32 %v1180_v18, %v1180_v18  ;;  %v307_v1 = vadd.f32 %v227_v12, %v226_v3  ;;  %v234_v12 = vmul.f32 %v1236_v49, %v1236_v49 }
  0x48   :  { %285 = vadd.xlane.f32.xlu1 %v284_v0  ;;  %v228_v0 = vmul.f32 %v1218_v39, %v1218_v39  ;;  %v303_v52 = vadd.f32 %v224_v33, %v223_v42  ;;  %v236_v42 = vmul.f32 %v1216_v38, %v1216_v38  ;;  %v244_v33 = vmul.f32 %v1256_v60, %v1256_v60 }
  0x4a   :  { %206 = vadd.xlane.f32.xlu0 %v205_v44  ;;  %v296_v44 = vadd.f32 %v295_v63, %v219_v6  ;;  %v308_v3 = vadd.f32 %v307_v1, %v228_v0  ;;  %v304_v6 = vadd.f32 %v303_v52, %v225_v26  ;;  %v235_v63 = vmul.f32 %v1214_v37, %v1214_v37 }
  0x4b   :  { %v245_v0 = vmul.f32 %v1258_v61, %v1258_v61  ;;  %v316_v1 = vadd.f32 %v315_v40, %v234_v12  ;;  %v242_v26 = vmul.f32 %v1234_v48, %v1234_v48  ;;  %v246_v52 = vmul.f32 %v1272_v17, %v1272_v17  ;;  %v2452_v17 = vld [vmem:[#allocation47_spill] sm:$0xff]  ;;  %v2453_v61 = vld [vmem:[#allocation60_spill] sm:$0xff] }
  0x4c   :  { %293 = vadd.xlane.f32.xlu1 %v292_v16  ;;  %v231_v16 = vmul.f32 %v1210_v35, %v1210_v35  ;;  %v319_v4 = vadd.f32 %v236_v42, %v235_v63  ;;  %v243_v12 = vmul.f32 %v1246_v55, %v1246_v55  ;;  %v248_v63 = vmul.f32 %v1252_v58, %v1252_v58 }
  0x4d   :  { %v331_v40 = vadd.f32 %v245_v0, %v244_v33  ;;  %v252_v33 = vmul.f32 %v1290_v43, %v1290_v43 }
  0x4e   :  { %289 = vadd.xlane.f32.xlu0 %v288_v11  ;;  %v239_v11 = vmul.f32 %v1240_v51, %v1240_v51  ;;  %v312_v13 = vadd.f32 %v311_v54, %v231_v16  ;;  %v250_v16 = vmul.f32 %v1274_v20, %v1274_v20  ;;  %v251_v54 = vmul.f32 %v1276_v21, %v1276_v21  ;;  %v2449_v20 = vld [vmem:[#allocation54_spill] sm:$0xff] }
  0x4f   :  { %v332_v42 = vadd.f32 %v331_v40, %v246_v52  ;;  %v2446_v40 = vld [vmem:[#allocation41_spill] sm:$0xff] }
  0x50   :  { %301 = vadd.xlane.f32.xlu1 %v300_v36  ;;  %v323_v36 = vadd.f32 %v239_v11, %v238_v62  ;;  %v320_v62 = vadd.f32 %v319_v4, %v237_v53  ;;  %v339_v0 = vadd.f32 %v251_v54, %v250_v16  ;;  %v254_v43 = vmul.f32 %v2446_v40, %v2446_v40  ;;  %v2448_v54 = vld [vmem:[#allocation56_spill] sm:$0xff] }
  0x51   :  { %v263_v21 = vmul.f32 %v2448_v54, %v2448_v54 }
  0x52   :  { %297 = vadd.xlane.f32.xlu0 %v296_v44  ;;  %v241_v44 = vmul.f32 %v1232_v47, %v1232_v47 }
  0x54   :  { %309 = vadd.xlane.f32.xlu1 %v308_v3  ;;  %v324_v3 = vadd.f32 %v323_v36, %v240_v14  ;;  %v327_v11 = vadd.f32 %v242_v26, %v241_v44  ;;  %v2443_v14 = vld [vmem:[#allocation49_spill] sm:$0xff]  ;;  %v2444_v36 = vld [vmem:[#allocation50_spill] sm:$0xff]  ;;  %v2445_v26 = vld [vmem:[#allocation40_spill] sm:$0xff] }
  0x55   :  { %v257_v53 = vmul.f32 %v2444_v36, %v2444_v36  ;;  %v253_v52 = vmul.f32 %v2445_v26, %v2445_v26  ;;  %v258_v36 = vmul.f32 %v2449_v20, %v2449_v20  ;;  %v2451_v26 = vld [vmem:[#allocation46_spill] sm:$0xff] }
  0x56   :  { %305 = vadd.xlane.f32.xlu0 %v304_v6  ;;  %v247_v6 = vmul.f32 %v1250_v57, %v1250_v57  ;;  %v328_v4 = vadd.f32 %v327_v11, %v243_v12  ;;  %v2450_v12 = vld [vmem:[#allocation45_spill] sm:$0xff]  ;;  %v259_v40 = vmul.f32 %v2451_v26, %v2451_v26 }
  0x57   :  { %v255_v11 = vmul.f32 %v2450_v12, %v2450_v12 }
  0x58   :  { %317 = vadd.xlane.f32.xlu1 %v316_v1  ;;  %v249_v1 = vmul.f32 %v1264_v7, %v1264_v7  ;;  %v335_v44 = vadd.f32 %v248_v63, %v247_v6  ;;  %v343_v63 = vadd.f32 %v254_v43, %v253_v52 }
  0x5a   :  { %313 = vadd.xlane.f32.xlu0 %v312_v13  ;;  %v256_v13 = vmul.f32 %v2443_v14, %v2443_v14  ;;  %v340_v14 = vadd.f32 %v339_v0, %v252_v33  ;;  %v336_v6 = vadd.f32 %v335_v44, %v249_v1  ;;  %v2454_v0 = vld [vmem:[#allocation61_spill] sm:$0xff]  ;;  %v2456_v1 = vld [vmem:[#allocation52_spill] sm:$0xff]  ;;  %v344_v20 = vadd.f32 %v343_v63, %v255_v11  ;;  %v2460_v63 = vld [vmem:[#allocation58_spill] sm:$0xff] }
  0x5b   :  { %v268_v54 = vmul.f32 %v2454_v0, %v2454_v0  ;;  %v265_v43 = vmul.f32 %v2456_v1, %v2456_v1  ;;  %v2457_v44 = vld [vmem:[#allocation53_spill] sm:$0xff] }
  0x5c   :  { %325 = vadd.xlane.f32.xlu1 %v324_v3  ;;  %v2447_v3 = vld [vmem:[#allocation55_spill] sm:$0xff]  ;;  %v266_v52 = vmul.f32 %v2457_v44, %v2457_v44 }
  0x5d   :  { %v262_v16 = vmul.f32 %v2447_v3, %v2447_v3  ;;  %v260_v3 = vmul.f32 %v2452_v17, %v2452_v17  ;;  %v2458_v17 = vld [vmem:[#allocation51_spill] sm:$0xff] }
  0x5e   :  { %321 = vadd.xlane.f32.xlu0 %v320_v62  ;;  %v347_v62 = vadd.f32 %v257_v53, %v256_v13  ;;  %v2455_v13 = vld [vmem:[#allocation62_spill] sm:$0xff]  ;;  %v359_v11 = vadd.f32 %v266_v52, %v265_v43  ;;  %v2464_v43 = vld [vmem:[#allocation63_spill] sm:$0xff] }
  0x5f   :  { %v355_v33 = vadd.f32 %v263_v21, %v262_v16  ;;  %v269_v53 = vmul.f32 %v2455_v13, %v2455_v13  ;;  %v351_v21 = vadd.f32 %v260_v3, %v259_v40  ;;  %v270_v16 = vmul.f32 %v1344_v24, %v1344_v24  ;;  %v2461_v40 = vld [vmem:[#allocation59_spill] sm:$0xff] }
  0x60   :  { %333 = vadd.xlane.f32.xlu1 %v332_v42  ;;  %v264_v42 = vmul.f32 %v2453_v61, %v2453_v61  ;;  %v261_v61 = vmul.f32 %v2458_v17, %v2458_v17  ;;  %v271_v13 = vmul.f32 %v2460_v63, %v2460_v63  ;;  %v272_v3 = vmul.f32 %v2461_v40, %v2461_v40 }
  0x61   :  { %v363_v26 = vadd.f32 %v269_v53, %v268_v54  ;;  %v2462_v54 = vld [vmem:[#allocation66_spill] sm:$0xff]  ;;  %v276_v53 = vmul.f32 %v1366_v5, %v1366_v5  ;;  %v273_v44 = vmul.f32 %v2464_v43, %v2464_v43 }
  0x62   :  { %329 = vadd.xlane.f32.xlu0 %v328_v4  ;;  %v348_v4 = vadd.f32 %v347_v62, %v258_v36  ;;  %v356_v0 = vadd.f32 %v355_v33, %v264_v42  ;;  %v275_v36 = vmul.f32 %v1348_v34, %v1348_v34  ;;  %v2459_v62 = vld [vmem:[#allocation57_spill] sm:$0xff]  ;;  %v352_v24 = vadd.f32 %v351_v21, %v261_v61 }
  0x63   :  { %v280_v42 = vmul.f32 %v2462_v54, %v2462_v54  ;;  %v364_v34 = vadd.f32 %v363_v26, %v270_v16  ;;  %v367_v52 = vadd.f32 %v272_v3, %v271_v13  ;;  %v282_v61 = vmul.f32 %v1374_v56, %v1374_v56  ;;  %v2466_v16 = vld [vmem:[#allocation65_spill] sm:$0xff] }
  0x64   :  { %341 = vadd.xlane.f32.xlu1 %v340_v14  ;;  %v274_v14 = vmul.f32 %v1346_v32, %v1346_v32  ;;  %v2463_v32 = vld [vmem:[#allocation67_spill] sm:$0xff]  ;;  %v278_v5 = vmul.f32 %v2466_v16, %v2466_v16  ;;  %v279_v56 = vmul.f32 %v1362_v46, %v1362_v46  ;;  %v713_v46 = vlaneseq }
  0x65   :  { %v281_v33 = vmul.f32 %v2463_v32, %v2463_v32 }
  0x66   :  { %337 = vadd.xlane.f32.xlu0 %v336_v6  ;;  %v267_v6 = vmul.f32 %v2459_v62, %v2459_v62  ;;  %v2465_v62 = vld [vmem:[#allocation64_spill] sm:$0xff] }
  0x67   :  { %v380_v21 = vsel %vm200_vm0, %v281_v33, 0.0  ;;  %v277_v26 = vmul.f32 %v2465_v62, %v2465_v62 }
  0x68   :  { %349 = vadd.xlane.f32.xlu1 %v348_v4  ;;  %v371_v4 = vadd.f32 %v275_v36, %v274_v14  ;;  %v360_v1 = vadd.f32 %v359_v11, %v267_v6  ;;  %v368_v36 = vadd.f32 %v367_v52, %v273_v44  ;;  %v382_v6 = vsel %vm200_vm0, %v282_v61, 0.0 }
  0x69   :  { %v375_v11 = vadd.f32 %v278_v5, %v277_v26  ;;  %v714_v52 = vshrl.u32 %v713_v46, 7  ;;  %v711_v5 = vld [vmem:[%s2261_s1] sm:$0x7]  ;;  %s1110_s1 = smov [#allocation5]  }
  0x6a   :  { %345 = vadd.xlane.f32.xlu0 %v344_v20  ;;  %v379_v20 = vsel %vm200_vm0, %v280_v42, 0.0 }
  0x6b   :  { %v381_v14 = vadd.f32 %v380_v21, %v379_v20  ;;  %v376_v13 = vadd.f32 %v375_v11, %v279_v56  ;;  %v715_v21 = vsub.s32 0, %v714_v52  ;;  %v719_v62 = vsub.s32 1, %v714_v52 }
  0x6c   :  { %357 = vadd.xlane.f32.xlu1 %v356_v0  ;;  %v372_v0 = vadd.f32 %v371_v4, %v276_v53  ;;  %v723_v26 = vsub.s32 2, %v714_v52 }
  0x6d   :  { %v383_v63 = vadd.f32 %v382_v6, %v381_v14  ;;  %v803_v14 = vld [vmem:[%s2262_s2] sm:$0x7]  ;;  %v1553_v11 = vrot.slane %v711_v5, %v715_v21  ;;  %s975_s2 = sshll.u32 %s1110_s1, 4  ;;  %s976_s2 = int_to_ptr.vmem [resolvable:$true] %s975_s2 }
  0x6e   :  { %353 = vadd.xlane.f32.xlu0 %v352_v24  ;;  %v1563_v52 = vrot.slane %v803_v14, %v715_v21  ;;  %v1565_v17 = vrot.slane %v803_v14, %v719_v62  ;;  %v2475_v21 = vld [vmem:[#allocation11_spill] sm:$0xff]  ;;  %s1081_s29 = scalar_lea.vmem %s976_s2, 9600  ;;  %p1086_p9 = scmp.lt.s32.totalorder %s976_s2, %s976_s2 }
  0x6f   :  { %2470 = vst [vmem:[#allocation53_spill] sm:$0xff] %v1553_v11  ;;  %p1082_p8 = scmp.ne.s32.totalorder %s976_s2, %s1081_s29  ;;  %p1087_p10 = scmp.lt.s32.totalorder %s1081_s29, %s1081_s29 }
  0x70   :  { %365 = vadd.xlane.f32.xlu1 %v364_v34  ;;  %2471 = vst [vmem:[#allocation57_spill] sm:$0xff] %v1563_v52 }
  0x71   :  { %p1088_p11 = por %p1087_p10, %p1086_p9 }
  0x72   :  { %361 = vadd.xlane.f32.xlu0 %v360_v1 }
  0x73   :  { %p1089_p12 = pnand %p1088_p11, %p1082_p8 }
  0x74   :  { %373 = vadd.xlane.f32.xlu1 %v372_v0 }
  0x76   :  { %369 = vadd.xlane.f32.xlu0 %v368_v36 }
  0x78   :  { %384 = vadd.xlane.f32.xlu1 %v383_v63  ;;  %v1555_v63 = vrot.slane %v711_v5, %v719_v62  ;;  %v2476_v62 = vld [vmem:[#allocation12_spill] sm:$0xff] }
  0x7a   :  { %377 = vadd.xlane.f32.xlu0 %v376_v13  ;;  %v1557_v13 = vrot.slane %v711_v5, %v723_v26  ;;  %v2480_v5 = vld [vmem:[#allocation18_spill] sm:$0xff] }
  0xa5   :  { %v115_v40 = vpop.xlane.xlu1 %114 }
  0xa6   :  { %v1542_v0 = vmul.f32 0.0026041667, %v115_v40 }
  0xa7   :  { %v107_v3 = vpop.xlane.xlu0 %106 }
  0xa8   :  { %2467 = vst [vmem:[#allocation61_spill] sm:$0xff] %v1542_v0  ;;  %v1547_v36 = vmul.f32 0.0026041667, %v107_v3  ;;  %v1567_v3 = vrot.slane %v803_v14, %v723_v26  ;;  %v2477_v14 = vld [vmem:[#allocation13_spill] sm:$0xff] }
  0xa9   :  { %v119_v24 = vpop.xlane.xlu1 %118 }
  0xaa   :  { %v1549_v6 = vmul.f32 0.0026041667, %v119_v24  ;;  %2472 = vst [vmem:[#allocation58_spill] sm:$0xff] %v1567_v3  ;;  %v1597_v52 = vmul.f32 %v1547_v36, %v1547_v36 }
  0xab   :  { %v111_v54 = vpop.xlane.xlu0 %110 }
  0xac   :  { %2468 = vst [vmem:[#allocation62_spill] sm:$0xff] %v1549_v6  ;;  %v1559_v46 = vmul.f32 0.0026041667, %v111_v54  ;;  %v1577_v54 = vmul.f32 %v1542_v0, %v1542_v0 }
  0xad   :  { %v127_v42 = vpop.xlane.xlu1 %126 }
  0xae   :  { %v1585_v12 = vmul.f32 0.0026041667, %v127_v42  ;;  %v2478_v42 = vld [vmem:[#allocation17_spill] sm:$0xff]  ;;  %v1619_v26 = vmul.f32 %v1559_v46, %v1559_v46 }
  0xaf   :  { %v123_v32 = vpop.xlane.xlu0 %122 }
  0xb0   :  { %v1591_v2 = vmul.f32 0.0026041667, %v123_v32  ;;  %v1609_v32 = vmul.f32 %v1549_v6, %v1549_v6  ;;  %v1629_v9 = vmul.f32 %v1585_v12, %v1585_v12 }
  0xb1   :  { %v135_v33 = vpop.xlane.xlu1 %134 }
  0xb2   :  { %v1603_v0 = vmul.f32 0.0026041667, %v135_v33  ;;  %v1651_v8 = vmul.f32 %v1591_v2, %v1591_v2 }
  0xb3   :  { %v131_v34 = vpop.xlane.xlu0 %130 }
  0xb4   :  { %2479 = vst [vmem:[#allocation59_spill] sm:$0xff] %v1603_v0  ;;  %v1615_v24 = vmul.f32 0.0026041667, %v131_v34  ;;  %v1662_v3 = vmul.f32 %v1603_v0, %v1603_v0 }
  0xb5   :  { %v143_v53 = vpop.xlane.xlu1 %142 }
  0xb6   :  { %v1637_v33 = vmul.f32 0.0026041667, %v143_v53  ;;  %v1673_v53 = vmul.f32 %v1615_v24, %v1615_v24 }
  0xb7   :  { %v139_v4 = vpop.xlane.xlu0 %138 }
  0xb8   :  { %2481 = vst [vmem:[#allocation66_spill] sm:$0xff] %v1637_v33  ;;  %v1645_v25 = vmul.f32 0.0026041667, %v139_v4  ;;  %v1685_v10 = vmul.f32 %v1637_v33, %v1637_v33 }
  0xb9   :  { %v1527_v1 = vpop.xlane.xlu1 %150 }
  0xba   :  { %v1658_v34 = vmul.f32 0.0026041667, %v1527_v1  ;;  %v1707_v27 = vmul.f32 %v1645_v25, %v1645_v25 }
  0xbb   :  { %v1529_v43 = vpop.xlane.xlu0 %146 }
  0xbc   :  { %2482 = vst [vmem:[#allocation67_spill] sm:$0xff] %v1658_v34  ;;  %v1669_v28 = vmul.f32 0.0026041667, %v1529_v43  ;;  %v2484_v43 = vld [vmem:[#allocation27_spill] sm:$0xff]  ;;  %v1718_v35 = vmul.f32 %v1658_v34, %v1658_v34 }
  0xbd   :  { %v1531_v44 = vpop.xlane.xlu1 %158 }
  0xbe   :  { %2483 = vst [vmem:[#allocation63_spill] sm:$0xff] %v1669_v28  ;;  %v1694_v6 = vmul.f32 0.0026041667, %v1531_v44  ;;  %v1729_v44 = vmul.f32 %v1669_v28, %v1669_v28 }
  0xbf   :  { %v1533_v61 = vpop.xlane.xlu0 %154 }
  0xc0   :  { %2485 = vst [vmem:[#allocation64_spill] sm:$0xff] %v1694_v6  ;;  %v1703_v33 = vmul.f32 0.0026041667, %v1533_v61 }
  0xc1   :  { %v1535_v20 = vpop.xlane.xlu1 %166 }
  0xc2   :  { %2486 = vst [vmem:[#allocation65_spill] sm:$0xff] %v1703_v33  ;;  %v1714_v0 = vmul.f32 0.0026041667, %v1535_v20  ;;  %v1748_v20 = vmul.f32 %v1694_v6, %v1694_v6 }
  0xc3   :  { %v1537_v16 = vpop.xlane.xlu0 %162 }
  0xc4   :  { %2487 = vst [vmem:[#allocation11_spill] sm:$0xff] %v1714_v0  ;;  %v1725_v48 = vmul.f32 0.0026041667, %v1537_v16  ;;  %v1757_v16 = vmul.f32 %v1703_v33, %v1703_v33  ;;  %v1767_v58 = vmul.f32 %v1714_v0, %v1714_v0 }
  0xc5   :  { %v1551_v56 = vpop.xlane.xlu1 %174 }
  0xc6   :  { %2469 = vst [vmem:[#allocation52_spill] sm:$0xff] %v1551_v56  ;;  %2488 = vst [vmem:[#allocation12_spill] sm:$0xff] %v1725_v48  ;;  %v1780_v0 = vmul.f32 %v1725_v48, %v1725_v48 }
  0xc7   :  { %v1561_v40 = vpop.xlane.xlu0 %170 }
  0xc8   :  { %v1772_v61 = vmul.f32 0.0026041667, %v1561_v40 }
  0xc9   :  { %v1593_v56 = vpop.xlane.xlu1 %182 }
  0xca   :  { %v1785_v40 = vmul.f32 0.0026041667, %v1593_v56 }
  0xcb   :  { %v1605_v11 = vpop.xlane.xlu0 %178 }
  0xcc   :  { %2501 = vst [vmem:[#allocation17_spill] sm:$0xff] %v1785_v40  ;;  %v1791_v37 = vmul.f32 0.0026041667, %v1605_v11 }
  0xcd   :  { %v1639_v18 = vpop.xlane.xlu1 %190  ;;  %v2490_v59 = vld [vmem:[#allocation52_spill] sm:$0xff] }
  0xce   :  { %v1744_v51 = vmul.f32 0.0026041667, %v2490_v59  ;;  %v1816_v45 = vmul.f32 0.0026041667, %v1639_v18 }
  0xcf   :  { %v1647_v19 = vpop.xlane.xlu0 %186 }
  0xd0   :  { %2491 = vst [vmem:[#allocation13_spill] sm:$0xff] %v1744_v51  ;;  %v1796_v57 = vmul.f32 %v1744_v51, %v1744_v51  ;;  %v1807_v51 = vmul.f32 %v1772_v61, %v1772_v61  ;;  %2507 = vst [vmem:[#allocation18_spill] sm:$0xff] %v1816_v45 }
  0xd1   :  { %v1681_v4 = vpop.xlane.xlu1 %198 }
  0xd3   :  { %v1696_v38 = vpop.xlane.xlu0 %194 }
  0xd5   :  { %v286_v1 = vpop.xlane.xlu1 %285 }
  0xd6   :  { %v411_v34 = vmul.f32 0.0026041667, %v286_v1 }
  0xd7   :  { %v1737_v47 = vpop.xlane.xlu0 %206 }
  0xd8   :  { %v461_v7 = vsub.f32 %v411_v34, %v1597_v52  ;;  %v2503_v34 = vld [vmem:[#allocation49_spill] sm:$0xff] }
  0xd9   :  { %v294_v28 = vpop.xlane.xlu1 %293 }
  0xda   :  { %v486_v1 = vmax.f32 %v461_v7, 0.0  ;;  %v413_v55 = vmul.f32 0.0026041667, %v294_v28 }
  0xdb   :  { %v290_v59 = vpop.xlane.xlu0 %289 }
  0xdc   :  { %v412_v6 = vmul.f32 0.0026041667, %v290_v59  ;;  %v511_v7 = vadd.f32 1e-06, %v486_v1  ;;  %v463_v28 = vsub.f32 %v413_v55, %v1577_v54 }
  0xdd   :  { %v302_v60 = vpop.xlane.xlu1 %301 }
  0xde   :  { %v462_v59 = vsub.f32 %v412_v6, %v1619_v26  ;;  %991 = vrsqrt.f32 %v511_v7  ;;  %v488_v1 = vmax.f32 %v463_v28, 0.0  ;;  %v415_v33 = vmul.f32 0.0026041667, %v302_v60 }
  0xdf   :  { %v298_v55 = vpop.xlane.xlu0 %297  ;;  %v1811_v7 = vmul.f32 %v1785_v40, %v1785_v40  ;;  %v2509_v40 = vld [vmem:[#allocation56_spill] sm:$0xff] }
  0xe0   :  { %v487_v48 = vmax.f32 %v462_v59, 0.0  ;;  %v414_v6 = vmul.f32 0.0026041667, %v298_v55  ;;  %v513_v26 = vadd.f32 1e-06, %v488_v1  ;;  %v465_v50 = vsub.f32 %v415_v33, %v1651_v8 }
  0xe1   :  { %v310_v1 = vpop.xlane.xlu1 %309  ;;  %v1820_v8 = vmul.f32 0.0026041667, %v1647_v19 }
  0xe2   :  { %v512_v52 = vadd.f32 1e-06, %v487_v48  ;;  %v464_v59 = vsub.f32 %v414_v6, %v1609_v32  ;;  %993 = vrsqrt.f32 %v513_v26  ;;  %v490_v33 = vmax.f32 %v465_v50, 0.0 }
  0xe3   :  { %2508 = vst [vmem:[#allocation27_spill] sm:$0xff] %v1820_v8  ;;  %v417_v55 = vmul.f32 0.0026041667, %v310_v1  ;;  %v306_v56 = vpop.xlane.xlu0 %305  ;;  %v1827_v48 = vmul.f32 0.0026041667, %v1696_v38  ;;  %v1833_v1 = vmul.f32 %v1791_v37, %v1791_v37 }
  0xe4   :  { %995 = vrsqrt.f32 %v512_v52  ;;  %v489_v54 = vmax.f32 %v464_v59, 0.0  ;;  %v416_v28 = vmul.f32 0.0026041667, %v306_v56  ;;  %v515_v32 = vadd.f32 1e-06, %v490_v33 }
  0xe5   :  { %2511 = vst [vmem:[#allocation52_spill] sm:$0xff] %v1827_v48  ;;  %v467_v19 = vsub.f32 %v417_v55, %v1673_v53  ;;  %v318_v26 = vpop.xlane.xlu1 %317  ;;  %v1837_v52 = vmul.f32 %v1816_v45, %v1816_v45  ;;  %v1841_v33 = vmul.f32 %v1820_v8, %v1820_v8  ;;  %v1844_v53 = vmul.f32 0.0026041667, %v1681_v4  ;;  %v2518_v8 = vld [vmem:[#allocation53_spill] sm:$0xff] }
  0xe6   :  { %v514_v6 = vadd.f32 1e-06, %v489_v54  ;;  %v466_v50 = vsub.f32 %v416_v28, %v1629_v9  ;;  %997 = vrsqrt.f32 %v515_v32  ;;  %v419_v59 = vmul.f32 0.0026041667, %v318_v26 }
  0xe7   :  { %2512 = vst [vmem:[#allocation49_spill] sm:$0xff] %v1837_v52  ;;  %v492_v56 = vmax.f32 %v467_v19, 0.0  ;;  %v314_v38 = vpop.xlane.xlu0 %313  ;;  %2513 = vst [vmem:[#allocation56_spill] sm:$0xff] %v1844_v53  ;;  %v1847_v55 = vmul.f32 0.0026041667, %v1737_v47  ;;  %v1852_v19 = vmul.f32 %v1827_v48, %v1827_v48  ;;  %v2515_v26 = vsub.f32 %v2475_v21, %v1547_v36 }
  0xe8   :  { %999 = vrsqrt.f32 %v514_v6  ;;  %v491_v9 = vmax.f32 %v466_v50, 0.0  ;;  %v418_v54 = vmul.f32 0.0026041667, %v314_v38  ;;  %v992_v28 = vpop.eup %991  ;;  %v469_v32 = vsub.f32 %v419_v59, %v1707_v27 }
  0xe9   :  { %v517_v60 = vadd.f32 1e-06, %v492_v56  ;;  %2514 = vst [vmem:[#allocation68_spill] sm:$0xff] %v1852_v19  ;;  %v636_v11 = vmul.f32 %v992_v28, %v2515_v26  ;;  %v2516_v4 = vsub.f32 %v2476_v62, %v1547_v36  ;;  %v2517_v50 = vsub.f32 %v2477_v14, %v1547_v36  ;;  %v326_v56 = vpop.xlane.xlu1 %325  ;;  %v2526_v14 = vld [vmem:[#allocation10_spill] sm:$0xff] }
  0xea   :  { %v516_v38 = vadd.f32 1e-06, %v491_v9  ;;  %v494_v27 = vmax.f32 %v469_v32, 0.0  ;;  %v468_v59 = vsub.f32 %v418_v54, %v1662_v3  ;;  %v1864_v45 = vmul.f32 0.0026041667, %v326_v56  ;;  %v2519_v3 = vld [vmem:[#allocation57_spill] sm:$0xff] }
  0xeb   :  { %v637_v6 = vmul.f32 %v992_v28, %v2516_v4  ;;  %v638_v47 = vmul.f32 %v992_v28, %v2517_v50  ;;  %1001 = vrsqrt.f32 %v517_v60  ;;  %v322_v48 = vpop.xlane.xlu0 %321  ;;  %v728_v21 = vmul.f32 %v2518_v8, %v636_v11  ;;  %v2520_v32 = vld [vmem:[#allocation58_spill] sm:$0xff]  ;;  %v2521_v50 = vld [vmem:[#allocation8_spill] sm:$0xff] }
  0xec   :  { %1003 = vrsqrt.f32 %v516_v38  ;;  %v994_v4 = vpop.eup %993  ;;  %v519_v52 = vadd.f32 1e-06, %v494_v27  ;;  %v493_v36 = vmax.f32 %v468_v59, 0.0  ;;  %v1871_v60 = vmul.f32 0.0026041667, %v322_v48  ;;  %v2524_v27 = vld [vmem:[#allocation9_spill] sm:$0xff] }
  0xed   :  { %v729_v26 = vmul.f32 %v1555_v63, %v637_v6  ;;  %v730_v62 = vmul.f32 %v1557_v13, %v638_v47  ;;  %v820_v54 = vadd.f32 %v2519_v3, %v728_v21  ;;  %v2522_v6 = vld [vmem:[#allocation61_spill] sm:$0xff]  ;;  %v1879_v38 = vpop.xlane.xlu1 %333  ;;  %v2528_v21 = vsub.f32 %v2478_v42, %v1559_v46 }
  0xee   :  { %v996_v9 = vpop.eup %995  ;;  %v2523_v56 = vsub.f32 %v2521_v50, %v2522_v6  ;;  %v2525_v59 = vsub.f32 %v2524_v27, %v2522_v6  ;;  %v2527_v48 = vsub.f32 %v2526_v14, %v2522_v6  ;;  %1005 = vrsqrt.f32 %v519_v52 }
  0xef   :  { %v821_v28 = vadd.f32 %v1565_v17, %v729_v26  ;;  %v822_v11 = vadd.f32 %v2520_v32, %v730_v62  ;;  %v639_v26 = vmul.f32 %v996_v9, %v2528_v21  ;;  %v2529_v62 = vsub.f32 %v2480_v5, %v1559_v46  ;;  %895 = vst [vmem:[#allocation5] sm:$0xff] %v820_v54 }
  0xf0   :  { %v642_v47 = vmul.f32 %v994_v4, %v2523_v56  ;;  %v643_v53 = vmul.f32 %v994_v4, %v2525_v59  ;;  %v644_v19 = vmul.f32 %v994_v4, %v2527_v48  ;;  %v2530_v56 = vsub.f32 %v1175_v15, %v1559_v46  ;;  %v1897_v4 = vpop.xlane.xlu0 %329  ;;  %v998_v6 = vpop.eup %997 }
  0xf1   :  { %v640_v18 = vmul.f32 %v996_v9, %v2529_v62  ;;  %896 = vst [vmem:[#allocation5 + $0x8] sm:$0xff] %v821_v28  ;;  %897 = vst [vmem:[#allocation5 + $0x10] sm:$0xff] %v822_v11  ;;  %v518_v14 = vadd.f32 1e-06, %v493_v36  ;;  %v731_v5 = vmul.f32 %v2518_v8, %v639_v26  ;;  %v2531_v15 = vsub.f32 %v1187_v22, %v1591_v2  ;;  %v1921_v62 = vpop.xlane.xlu1 %341 }
  0xf2   :  { %v734_v50 = vmul.f32 %v2518_v8, %v642_v47  ;;  %v641_v27 = vmul.f32 %v996_v9, %v2530_v56  ;;  %v735_v42 = vmul.f32 %v1555_v63, %v643_v53  ;;  %v736_v59 = vmul.f32 %v1557_v13, %v644_v19  ;;  %v1000_v28 = vpop.eup %999  ;;  %v2534_v56 = vld [vmem:[#allocation14_spill] sm:$0xff] }
  0xf3   :  { %v732_v54 = vmul.f32 %v1555_v63, %v640_v18  ;;  %v648_v46 = vmul.f32 %v998_v6, %v2531_v15  ;;  %v2532_v52 = vsub.f32 %v1189_v23, %v1591_v2  ;;  %v823_v9 = vadd.f32 %v2519_v3, %v731_v5  ;;  %v2537_v5 = vld [vmem:[#allocation15_spill] sm:$0xff] }
  0xf4   :  { %v826_v11 = vadd.f32 %v2519_v3, %v734_v50  ;;  %v733_v47 = vmul.f32 %v1557_v13, %v641_v27  ;;  %v827_v53 = vadd.f32 %v1565_v17, %v735_v42  ;;  %v828_v19 = vadd.f32 %v2520_v32, %v736_v59  ;;  %v2535_v27 = vld [vmem:[#allocation62_spill] sm:$0xff] }
  0xf5   :  { %v649_v36 = vmul.f32 %v998_v6, %v2532_v52  ;;  %v824_v18 = vadd.f32 %v1565_v17, %v732_v54  ;;  %v2533_v21 = vsub.f32 %v1200_v29, %v1591_v2  ;;  %v740_v26 = vmul.f32 %v2518_v8, %v648_v46  ;;  %v1002_v50 = vpop.eup %1001  ;;  %898 = vst [vmem:[#allocation5 + $0x18] sm:$0xff] %v823_v9  ;;  %v2539_v29 = vld [vmem:[#allocation16_spill] sm:$0xff] }
  0xf6   :  { %901 = vst [vmem:[#allocation5 + $0x30] sm:$0xff] %v826_v11  ;;  %v825_v48 = vadd.f32 %v2520_v32, %v733_v47  ;;  %902 = vst [vmem:[#allocation5 + $0x38] sm:$0xff] %v827_v53  ;;  %v2536_v42 = vsub.f32 %v2534_v56, %v2535_v27  ;;  %v2538_v54 = vsub.f32 %v2537_v5, %v2535_v27  ;;  %1007 = vrsqrt.f32 %v518_v14  ;;  %v1004_v47 = vpop.eup %1003 }
  0xf7   :  { %v650_v22 = vmul.f32 %v998_v6, %v2533_v21  ;;  %v741_v23 = vmul.f32 %v1555_v63, %v649_v36  ;;  %903 = vst [vmem:[#allocation5 + $0x40] sm:$0xff] %v828_v19  ;;  %899 = vst [vmem:[#allocation5 + $0x20] sm:$0xff] %v824_v18  ;;  %v2540_v6 = vsub.f32 %v2539_v29, %v2535_v27  ;;  %v1938_v19 = vpop.xlane.xlu0 %337 }
  0xf8   :  { %v645_v59 = vmul.f32 %v1000_v28, %v2536_v42  ;;  %v646_v2 = vmul.f32 %v1000_v28, %v2538_v54  ;;  %900 = vst [vmem:[#allocation5 + $0x28] sm:$0xff] %v825_v48  ;;  %v832_v46 = vadd.f32 %v2519_v3, %v740_v26  ;;  %v2541_v36 = vsub.f32 %v1202_v30, %v1615_v24  ;;  %v1006_v54 = vpop.eup %1005 }
  0xf9   :  { %v647_v11 = vmul.f32 %v1000_v28, %v2540_v6  ;;  %v742_v15 = vmul.f32 %v1557_v13, %v650_v22  ;;  %v833_v52 = vadd.f32 %v1565_v17, %v741_v23  ;;  %v2542_v28 = vsub.f32 %v1204_v31, %v1615_v24  ;;  %v2544_v23 = vld [vmem:[#allocation19_spill] sm:$0xff]  ;;  %v2548_v6 = vld [vmem:[#allocation21_spill] sm:$0xff] }
  0xfa   :  { %v654_v53 = vmul.f32 %v1002_v50, %v2541_v36  ;;  %v737_v9 = vmul.f32 %v2518_v8, %v645_v59  ;;  %v738_v18 = vmul.f32 %v1555_v63, %v646_v2  ;;  %907 = vst [vmem:[#allocation5 + $0x60] sm:$0xff] %v832_v46  ;;  %v2543_v30 = vsub.f32 %v1218_v39, %v1615_v24  ;;  %v2546_v24 = vld [vmem:[#allocation20_spill] sm:$0xff]  ;;  %v1966_v46 = vpop.xlane.xlu1 %349 }
  0xfb   :  { %v739_v14 = vmul.f32 %v1557_v13, %v647_v11  ;;  %v655_v48 = vmul.f32 %v1002_v50, %v2542_v28  ;;  %v834_v21 = vadd.f32 %v2520_v32, %v742_v15  ;;  %908 = vst [vmem:[#allocation5 + $0x68] sm:$0xff] %v833_v52  ;;  %v2545_v56 = vsub.f32 %v2544_v23, %v1585_v12 }
  0xfc   :  { %v656_v22 = vmul.f32 %v1002_v50, %v2543_v30  ;;  %v746_v26 = vmul.f32 %v2518_v8, %v654_v53  ;;  %v829_v42 = vadd.f32 %v2519_v3, %v737_v9  ;;  %v830_v59 = vadd.f32 %v1565_v17, %v738_v18  ;;  %v346_v30 = vpop.xlane.xlu0 %345 }
  0xfd   :  { %v651_v27 = vmul.f32 %v1004_v47, %v2545_v56  ;;  %v831_v31 = vadd.f32 %v2520_v32, %v739_v14  ;;  %v747_v5 = vmul.f32 %v1555_v63, %v655_v48  ;;  %909 = vst [vmem:[#allocation5 + $0x70] sm:$0xff] %v834_v21  ;;  %v2547_v50 = vsub.f32 %v2546_v24, %v1585_v12 }
  0xfe   :  { %v748_v2 = vmul.f32 %v1557_v13, %v656_v22  ;;  %v838_v39 = vadd.f32 %v2519_v3, %v746_v26  ;;  %v2549_v11 = vsub.f32 %v2548_v6, %v1585_v12  ;;  %904 = vst [vmem:[#allocation5 + $0x48] sm:$0xff] %v829_v42  ;;  %905 = vst [vmem:[#allocation5 + $0x50] sm:$0xff] %v830_v59 }
  0xff   :  { %v652_v29 = vmul.f32 %v1004_v47, %v2547_v50  ;;  %906 = vst [vmem:[#allocation5 + $0x58] sm:$0xff] %v831_v31  ;;  %v839_v52 = vadd.f32 %v1565_v17, %v747_v5  ;;  %v743_v36 = vmul.f32 %v2518_v8, %v651_v27  ;;  %v2550_v53 = vsub.f32 %v2484_v43, %v1645_v25  ;;  %v2557_v50 = vld [vmem:[#allocation23_spill] sm:$0xff] }
 0x100   :  { %v653_v15 = vmul.f32 %v1004_v47, %v2549_v11  ;;  %v2551_v18 = vsub.f32 %v1222_v41, %v1645_v25  ;;  %v840_v12 = vadd.f32 %v2520_v32, %v748_v2  ;;  %913 = vst [vmem:[#allocation5 + $0x90] sm:$0xff] %v838_v39  ;;  %v2552_v48 = vsub.f32 %v1236_v49, %v1645_v25  ;;  %v1008_v42 = vpop.eup %1007  ;;  %v2555_v2 = vld [vmem:[#allocation59_spill] sm:$0xff] }
 0x101   :  { %v660_v9 = vmul.f32 %v1006_v54, %v2550_v53  ;;  %v744_v47 = vmul.f32 %v1555_v63, %v652_v29  ;;  %914 = vst [vmem:[#allocation5 + $0x98] sm:$0xff] %v839_v52  ;;  %v835_v43 = vadd.f32 %v2519_v3, %v743_v36  ;;  %v2553_v26 = vsub.f32 %v1864_v45, %v1729_v44  ;;  %v2559_v29 = vld [vmem:[#allocation24_spill] sm:$0xff] }
 0x102   :  { %v661_v14 = vmul.f32 %v1006_v54, %v2551_v18  ;;  %v745_v28 = vmul.f32 %v1557_v13, %v653_v15  ;;  %v662_v21 = vmul.f32 %v1006_v54, %v2552_v48  ;;  %915 = vst [vmem:[#allocation5 + $0xa0] sm:$0xff] %v840_v12  ;;  %v470_v49 = vsub.f32 %v1871_v60, %v1685_v10  ;;  %v2554_v54 = vld [vmem:[#allocation22_spill] sm:$0xff]  ;;  %v358_v15 = vpop.xlane.xlu1 %357  ;;  %v354_v12 = vpop.xlane.xlu0 %353 }
 0x103   :  { %v752_v22 = vmul.f32 %v2518_v8, %v660_v9  ;;  %v496_v23 = vmax.f32 %v2553_v26, 0.0  ;;  %v836_v56 = vadd.f32 %v1565_v17, %v744_v47  ;;  %910 = vst [vmem:[#allocation5 + $0x78] sm:$0xff] %v835_v43  ;;  %v423_v45 = vmul.f32 0.0026041667, %v1879_v38 }
 0x104   :  { %v753_v41 = vmul.f32 %v1555_v63, %v661_v14  ;;  %v837_v27 = vadd.f32 %v2520_v32, %v745_v28  ;;  %v754_v25 = vmul.f32 %v1557_v13, %v662_v21  ;;  %v2556_v39 = vsub.f32 %v2554_v54, %v2555_v2 }
 0x105   :  { %v844_v59 = vadd.f32 %v2519_v3, %v752_v22  ;;  %v521_v5 = vadd.f32 1e-06, %v496_v23  ;;  %911 = vst [vmem:[#allocation5 + $0x80] sm:$0xff] %v836_v56  ;;  %v2558_v10 = vsub.f32 %v2557_v50, %v2555_v2  ;;  %v2560_v6 = vsub.f32 %v2559_v29, %v2555_v2 }
 0x106   :  { %v845_v31 = vadd.f32 %v1565_v17, %v753_v41  ;;  %912 = vst [vmem:[#allocation5 + $0x88] sm:$0xff] %v837_v27  ;;  %v846_v44 = vadd.f32 %v2520_v32, %v754_v25  ;;  %v657_v24 = vmul.f32 %v1008_v42, %v2556_v39  ;;  %v495_v38 = vmax.f32 %v470_v49, 0.0  ;;  %v366_v56 = vpop.xlane.xlu1 %365 }
 0x107   :  { %v658_v60 = vmul.f32 %v1008_v42, %v2558_v10  ;;  %v659_v11 = vmul.f32 %v1008_v42, %v2560_v6  ;;  %919 = vst [vmem:[#allocation5 + $0xc0] sm:$0xff] %v844_v59  ;;  %1009 = vrsqrt.f32 %v521_v5  ;;  %v473_v52 = vsub.f32 %v423_v45, %v1757_v16  ;;  %v362_v5 = vpop.xlane.xlu0 %361  ;;  %v2561_v10 = vld [vmem:[#allocation31_spill] sm:$0xff]  ;;  %v2564_v6 = vld [vmem:[#allocation32_spill] sm:$0xff] }
 0x108   :  { %920 = vst [vmem:[#allocation5 + $0xc8] sm:$0xff] %v845_v31  ;;  %v422_v36 = vmul.f32 0.0026041667, %v1897_v4  ;;  %921 = vst [vmem:[#allocation5 + $0xd0] sm:$0xff] %v846_v44  ;;  %v749_v53 = vmul.f32 %v2518_v8, %v657_v24  ;;  %v425_v14 = vmul.f32 0.0026041667, %v1921_v62  ;;  %v2022_v27 = vmul.f32 %v1847_v55, %v1847_v55 }
 0x109   :  { %v750_v9 = vmul.f32 %v1555_v63, %v658_v60  ;;  %v751_v18 = vmul.f32 %v1557_v13, %v659_v11  ;;  %v520_v47 = vadd.f32 1e-06, %v495_v38  ;;  %v498_v28 = vmax.f32 %v473_v52, 0.0 }
 0x10a   :  { %v472_v48 = vsub.f32 %v422_v36, %v1718_v35  ;;  %v424_v21 = vmul.f32 0.0026041667, %v1938_v19  ;;  %v841_v16 = vadd.f32 %v2519_v3, %v749_v53  ;;  %v475_v22 = vsub.f32 %v425_v14, %v1780_v0 }
 0x10b   :  { %v842_v4 = vadd.f32 %v1565_v17, %v750_v9  ;;  %v843_v43 = vadd.f32 %v2520_v32, %v751_v18  ;;  %1011 = vrsqrt.f32 %v520_v47  ;;  %v523_v41 = vadd.f32 1e-06, %v498_v28 }
 0x10c   :  { %v497_v26 = vmax.f32 %v472_v48, 0.0  ;;  %v474_v62 = vsub.f32 %v424_v21, %v1748_v20  ;;  %916 = vst [vmem:[#allocation5 + $0xa8] sm:$0xff] %v841_v16  ;;  %v500_v23 = vmax.f32 %v475_v22, 0.0  ;;  %v427_v35 = vmul.f32 0.0026041667, %v1966_v46  ;;  %v2568_v22 = vld [vmem:[#allocation25_spill] sm:$0xff] }
 0x10d   :  { %917 = vst [vmem:[#allocation5 + $0xb0] sm:$0xff] %v842_v4  ;;  %918 = vst [vmem:[#allocation5 + $0xb8] sm:$0xff] %v843_v43  ;;  %v426_v19 = vmul.f32 0.0026041667, %v346_v30  ;;  %1013 = vrsqrt.f32 %v523_v41  ;;  %v429_v49 = vmul.f32 0.0026041667, %v358_v15 }
 0x10e   :  { %v522_v25 = vadd.f32 1e-06, %v497_v26  ;;  %v499_v0 = vmax.f32 %v474_v62, 0.0  ;;  %v525_v42 = vadd.f32 1e-06, %v500_v23  ;;  %v477_v59 = vsub.f32 %v427_v35, %v1807_v51  ;;  %v2566_v15 = vld [vmem:[#allocation36_spill] sm:$0xff] }
 0x10f   :  { %v476_v20 = vsub.f32 %v426_v19, %v1767_v58  ;;  %v428_v31 = vmul.f32 0.0026041667, %v354_v12  ;;  %v479_v46 = vsub.f32 %v429_v49, %v1833_v1  ;;  %v431_v30 = vmul.f32 0.0026041667, %v366_v56  ;;  %v2562_v58 = vld [vmem:[#allocation63_spill] sm:$0xff]  ;;  %v2569_v41 = vld [vmem:[#allocation66_spill] sm:$0xff] }
 0x110   :  { %1015 = vrsqrt.f32 %v522_v25  ;;  %v524_v45 = vadd.f32 1e-06, %v499_v0  ;;  %v502_v44 = vmax.f32 %v477_v59, 0.0  ;;  %v430_v51 = vmul.f32 0.0026041667, %v362_v5  ;;  %v2571_v35 = vld [vmem:[#allocation26_spill] sm:$0xff] }
 0x111   :  { %1017 = vrsqrt.f32 %v525_v42  ;;  %v501_v54 = vmax.f32 %v476_v20, 0.0  ;;  %v478_v2 = vsub.f32 %v428_v31, %v1796_v57  ;;  %v1010_v39 = vpop.eup %1009  ;;  %v504_v24 = vmax.f32 %v479_v46, 0.0  ;;  %v2573_v25 = vld [vmem:[#allocation28_spill] sm:$0xff]  ;;  %v2575_v59 = vld [vmem:[#allocation37_spill] sm:$0xff] }
 0x112   :  { %1019 = vrsqrt.f32 %v524_v45  ;;  %v481_v50 = vsub.f32 %v431_v30, %v1841_v33  ;;  %v2563_v60 = vsub.f32 %v2561_v10, %v2562_v58  ;;  %v2565_v11 = vsub.f32 %v2564_v6, %v2562_v58  ;;  %v2576_v20 = vld [vmem:[#allocation65_spill] sm:$0xff]  ;;  %v2578_v45 = vld [vmem:[#allocation38_spill] sm:$0xff] }
 0x113   :  { %v2567_v38 = vsub.f32 %v2566_v15, %v2562_v58  ;;  %v527_v36 = vadd.f32 1e-06, %v502_v44  ;;  %v526_v57 = vadd.f32 1e-06, %v501_v54  ;;  %v529_v53 = vadd.f32 1e-06, %v504_v24 }
 0x114   :  { %v666_v29 = vmul.f32 %v1010_v39, %v2563_v60  ;;  %v667_v1 = vmul.f32 %v1010_v39, %v2565_v11  ;;  %v503_v9 = vmax.f32 %v478_v2, 0.0  ;;  %v506_v18 = vmax.f32 %v481_v50, 0.0  ;;  %v2580_v44 = vld [vmem:[#allocation42_spill] sm:$0xff] }
 0x115   :  { %v668_v52 = vmul.f32 %v1010_v39, %v2567_v38  ;;  %1021 = vrsqrt.f32 %v527_v36  ;;  %v1012_v47 = vpop.eup %1011  ;;  %v480_v21 = vsub.f32 %v430_v51, %v1811_v7  ;;  %v2570_v26 = vsub.f32 %v2568_v22, %v2569_v41  ;;  %v2582_v38 = vld [vmem:[#allocation29_spill] sm:$0xff]  ;;  %v2590_v22 = vld [vmem:[#allocation12_spill] sm:$0xff] }
 0x116   :  { %v758_v33 = vmul.f32 %v2518_v8, %v666_v29  ;;  %v759_v14 = vmul.f32 %v1555_v63, %v667_v1  ;;  %1023 = vrsqrt.f32 %v526_v57  ;;  %v528_v28 = vadd.f32 1e-06, %v503_v9 }
 0x117   :  { %v760_v12 = vmul.f32 %v1557_v13, %v668_v52  ;;  %v2041_v48 = vadd.f32 1e-06, %v506_v18  ;;  %v663_v62 = vmul.f32 %v1012_v47, %v2570_v26  ;;  %v1014_v23 = vpop.eup %1013  ;;  %v2572_v19 = vsub.f32 %v2571_v35, %v2569_v41  ;;  %v2583_v52 = vld [vmem:[#allocation67_spill] sm:$0xff] }
 0x118   :  { %v850_v16 = vadd.f32 %v2519_v3, %v758_v33  ;;  %v851_v4 = vadd.f32 %v1565_v17, %v759_v14  ;;  %v2574_v0 = vsub.f32 %v2573_v25, %v2569_v41  ;;  %1025 = vrsqrt.f32 %v529_v53  ;;  %v2585_v53 = vld [vmem:[#allocation30_spill] sm:$0xff]  ;;  %v2594_v25 = vld [vmem:[#allocation48_spill] sm:$0xff] }
 0x119   :  { %v852_v43 = vadd.f32 %v2520_v32, %v760_v12  ;;  %v664_v56 = vmul.f32 %v1012_v47, %v2572_v19  ;;  %v505_v7 = vmax.f32 %v480_v21, 0.0  ;;  %v755_v42 = vmul.f32 %v2518_v8, %v663_v62  ;;  %v2592_v62 = vld [vmem:[#allocation44_spill] sm:$0xff] }
 0x11a   :  { %v665_v49 = vmul.f32 %v1012_v47, %v2574_v0  ;;  %925 = vst [vmem:[#allocation5 + $0xf0] sm:$0xff] %v850_v16  ;;  %926 = vst [vmem:[#allocation5 + $0xf8] sm:$0xff] %v851_v4  ;;  %v2577_v31 = vsub.f32 %v2575_v59, %v2576_v20  ;;  %v2579_v46 = vsub.f32 %v2578_v45, %v2576_v20  ;;  %v1016_v39 = vpop.eup %1015  ;;  %1027 = vrsqrt.f32 %v528_v28  ;;  %v2587_v47 = vld [vmem:[#allocation33_spill] sm:$0xff] }
 0x11b   :  { %927 = vst [vmem:[#allocation5 + $0x100] sm:$0xff] %v852_v43  ;;  %v2581_v54 = vsub.f32 %v2580_v44, %v2576_v20  ;;  %v756_v24 = vmul.f32 %v1555_v63, %v664_v56  ;;  %v2068_v51 = vadd.f32 1e-06, %v505_v7  ;;  %v1018_v10 = vpop.eup %1017  ;;  %v847_v58 = vadd.f32 %v2519_v3, %v755_v42  ;;  %v2589_v43 = vld [vmem:[#allocation43_spill] sm:$0xff]  ;;  %v2596_v7 = vld [vmem:[#allocation34_spill] sm:$0xff]  ;;  %v2597_v42 = vld [vmem:[#allocation64_spill] sm:$0xff] }
 0x11c   :  { %v672_v5 = vmul.f32 %v1014_v23, %v2577_v31  ;;  %v673_v30 = vmul.f32 %v1014_v23, %v2579_v46  ;;  %v757_v50 = vmul.f32 %v1557_v13, %v665_v49  ;;  %v1020_v11 = vpop.eup %1019  ;;  %v2584_v36 = vsub.f32 %v2582_v38, %v2583_v52  ;;  %v2599_v31 = vld [vmem:[#allocation35_spill] sm:$0xff] }
 0x11d   :  { %v674_v2 = vmul.f32 %v1014_v23, %v2581_v54  ;;  %v848_v1 = vadd.f32 %v1565_v17, %v756_v24  ;;  %v2586_v9 = vsub.f32 %v2585_v53, %v2583_v52  ;;  %922 = vst [vmem:[#allocation5 + $0xd8] sm:$0xff] %v847_v58  ;;  %v2588_v28 = vsub.f32 %v2587_v47, %v2583_v52  ;;  %v2604_v53 = vld [vmem:[#allocation50_spill] sm:$0xff] }
 0x11e   :  { %v764_v60 = vmul.f32 %v2518_v8, %v672_v5  ;;  %v765_v29 = vmul.f32 %v1555_v63, %v673_v30  ;;  %v849_v15 = vadd.f32 %v2520_v32, %v757_v50  ;;  %v669_v57 = vmul.f32 %v1016_v39, %v2584_v36  ;;  %v2601_v50 = vld [vmem:[#allocation39_spill] sm:$0xff] }
 0x11f   :  { %v766_v6 = vmul.f32 %v1557_v13, %v674_v2  ;;  %v670_v18 = vmul.f32 %v1016_v39, %v2586_v9  ;;  %v671_v21 = vmul.f32 %v1016_v39, %v2588_v28  ;;  %923 = vst [vmem:[#allocation5 + $0xe0] sm:$0xff] %v848_v1  ;;  %v2591_v41 = vsub.f32 %v2589_v43, %v2590_v22  ;;  %v1022_v19 = vpop.eup %1021 }
 0x120   :  { %v856_v33 = vadd.f32 %v2519_v3, %v764_v60  ;;  %v857_v14 = vadd.f32 %v1565_v17, %v765_v29  ;;  %924 = vst [vmem:[#allocation5 + $0xe8] sm:$0xff] %v849_v15  ;;  %v761_v16 = vmul.f32 %v2518_v8, %v669_v57  ;;  %v2593_v23 = vsub.f32 %v2592_v62, %v2590_v22  ;;  %v1024_v46 = vpop.eup %1023  ;;  %v2611_v62 = vld [vmem:[#allocation41_spill] sm:$0xff] }
 0x121   :  { %v858_v12 = vadd.f32 %v2520_v32, %v766_v6  ;;  %v762_v4 = vmul.f32 %v1555_v63, %v670_v18  ;;  %v678_v26 = vmul.f32 %v1018_v10, %v2591_v41  ;;  %v763_v56 = vmul.f32 %v1557_v13, %v671_v21  ;;  %v2608_v21 = vld [vmem:[#allocation40_spill] sm:$0xff] }
 0x122   :  { %v679_v35 = vmul.f32 %v1018_v10, %v2593_v23  ;;  %931 = vst [vmem:[#allocation5 + $0x120] sm:$0xff] %v856_v33  ;;  %932 = vst [vmem:[#allocation5 + $0x128] sm:$0xff] %v857_v14  ;;  %v2595_v0 = vsub.f32 %v2594_v25, %v2590_v22  ;;  %v2598_v59 = vsub.f32 %v2596_v7, %v2597_v42  ;;  %v1026_v29 = vpop.eup %1025  ;;  %v374_v22 = vpop.xlane.xlu1 %373  ;;  %1029 = vrsqrt.f32 %v2041_v48 }
 0x123   :  { %933 = vst [vmem:[#allocation5 + $0x130] sm:$0xff] %v858_v12  ;;  %v2600_v5 = vsub.f32 %v2599_v31, %v2597_v42  ;;  %v853_v30 = vadd.f32 %v2519_v3, %v761_v16  ;;  %v854_v44 = vadd.f32 %v1565_v17, %v762_v4  ;;  %v770_v54 = vmul.f32 %v2518_v8, %v678_v26  ;;  %v2606_v12 = vld [vmem:[#allocation54_spill] sm:$0xff]  ;;  %v2609_v16 = vld [vmem:[#allocation11_spill] sm:$0xff]  ;;  %v370_v25 = vpop.xlane.xlu0 %369 }
 0x124   :  { %v680_v49 = vmul.f32 %v1018_v10, %v2595_v0  ;;  %v675_v20 = vmul.f32 %v1020_v11, %v2598_v59  ;;  %v771_v2 = vmul.f32 %v1555_v63, %v679_v35  ;;  %v855_v39 = vadd.f32 %v2520_v32, %v763_v56  ;;  %v1028_v33 = vpop.eup %1027  ;;  %v2613_v56 = vld [vmem:[#allocation45_spill] sm:$0xff] }
 0x125   :  { %v676_v45 = vmul.f32 %v1020_v11, %v2600_v5  ;;  %v2602_v10 = vsub.f32 %v2601_v50, %v2597_v42  ;;  %928 = vst [vmem:[#allocation5 + $0x108] sm:$0xff] %v853_v30  ;;  %929 = vst [vmem:[#allocation5 + $0x110] sm:$0xff] %v854_v44  ;;  %v862_v6 = vadd.f32 %v2519_v3, %v770_v54  ;;  %v2615_v42 = vld [vmem:[#allocation55_spill] sm:$0xff]  ;;  %1031 = vrsqrt.f32 %v2068_v51 }
 0x126   :  { %v772_v24 = vmul.f32 %v1557_v13, %v680_v49  ;;  %v767_v60 = vmul.f32 %v2518_v8, %v675_v20  ;;  %v863_v1 = vadd.f32 %v1565_v17, %v771_v2  ;;  %v2603_v38 = vsub.f32 %v2503_v34, %v1772_v61  ;;  %930 = vst [vmem:[#allocation5 + $0x118] sm:$0xff] %v855_v39  ;;  %v2618_v2 = vld [vmem:[#allocation60_spill] sm:$0xff] }
 0x127   :  { %v677_v58 = vmul.f32 %v1020_v11, %v2602_v10  ;;  %v768_v15 = vmul.f32 %v1555_v63, %v676_v45  ;;  %v2605_v9 = vsub.f32 %v2604_v53, %v1772_v61  ;;  %937 = vst [vmem:[#allocation5 + $0x150] sm:$0xff] %v862_v6  ;;  %v2607_v34 = vsub.f32 %v2606_v12, %v1772_v61  ;;  %v2621_v6 = vld [vmem:[#allocation13_spill] sm:$0xff] }
 0x128   :  { %v684_v52 = vmul.f32 %v1022_v19, %v2603_v38  ;;  %v864_v36 = vadd.f32 %v2520_v32, %v772_v24  ;;  %v859_v57 = vadd.f32 %v2519_v3, %v767_v60  ;;  %938 = vst [vmem:[#allocation5 + $0x158] sm:$0xff] %v863_v1  ;;  %v2610_v4 = vsub.f32 %v2608_v21, %v2609_v16 }
 0x129   :  { %v769_v11 = vmul.f32 %v1557_v13, %v677_v58  ;;  %v685_v18 = vmul.f32 %v1022_v19, %v2605_v9  ;;  %v860_v14 = vadd.f32 %v1565_v17, %v768_v15  ;;  %v686_v47 = vmul.f32 %v1022_v19, %v2607_v34  ;;  %v385_v9 = vpop.xlane.xlu1 %384  ;;  %v378_v34 = vpop.xlane.xlu0 %377 }
 0x12a   :  { %v776_v28 = vmul.f32 %v2518_v8, %v684_v52  ;;  %v681_v43 = vmul.f32 %v1024_v46, %v2610_v4  ;;  %939 = vst [vmem:[#allocation5 + $0x160] sm:$0xff] %v864_v36  ;;  %934 = vst [vmem:[#allocation5 + $0x138] sm:$0xff] %v859_v57  ;;  %v2612_v23 = vsub.f32 %v2611_v62, %v2609_v16  ;;  %v433_v12 = vmul.f32 0.0026041667, %v374_v22 }
 0x12b   :  { %v861_v41 = vadd.f32 %v2520_v32, %v769_v11  ;;  %v777_v26 = vmul.f32 %v1555_v63, %v685_v18  ;;  %v2614_v61 = vsub.f32 %v2613_v56, %v2609_v16  ;;  %935 = vst [vmem:[#allocation5 + $0x140] sm:$0xff] %v860_v14  ;;  %v778_v0 = vmul.f32 %v1557_v13, %v686_v47  ;;  %v2625_v11 = vld [vmem:[#allocation51_spill] sm:$0xff]  ;;  %v2627_v16 = vld [vmem:[#allocation68_spill] sm:$0xff]  ;;  %v2629_v56 = vld [vmem:[#allocation49_spill] sm:$0xff] }
 0x12c   :  { %v682_v35 = vmul.f32 %v1024_v46, %v2612_v23  ;;  %v868_v49 = vadd.f32 %v2519_v3, %v776_v28  ;;  %v773_v7 = vmul.f32 %v2518_v8, %v681_v43  ;;  %v2616_v59 = vsub.f32 %v2615_v42, %v1791_v37 }
 0x12d   :  { %v683_v19 = vmul.f32 %v1024_v46, %v2614_v61  ;;  %936 = vst [vmem:[#allocation5 + $0x148] sm:$0xff] %v861_v41  ;;  %v869_v31 = vadd.f32 %v1565_v17, %v777_v26  ;;  %v2617_v46 = vsub.f32 %v2509_v40, %v1791_v37  ;;  %v870_v44 = vadd.f32 %v2520_v32, %v778_v0  ;;  %v2620_v40 = vld [vmem:[#allocation46_spill] sm:$0xff]  ;;  %v2628_v26 = vld [vmem:[#allocation56_spill] sm:$0xff] }
 0x12e   :  { %v690_v20 = vmul.f32 %v1026_v29, %v2616_v59  ;;  %v774_v5 = vmul.f32 %v1555_v63, %v682_v35  ;;  %943 = vst [vmem:[#allocation5 + $0x180] sm:$0xff] %v868_v49  ;;  %v865_v54 = vadd.f32 %v2519_v3, %v773_v7  ;;  %v2619_v39 = vsub.f32 %v2618_v2, %v1791_v37  ;;  %v1044_v2 = vld [vmem:[#allocation2 + $0x1c8] sm:$0xff] }
 0x12f   :  { %v775_v45 = vmul.f32 %v1557_v13, %v683_v19  ;;  %v691_v30 = vmul.f32 %v1026_v29, %v2617_v46  ;;  %944 = vst [vmem:[#allocation5 + $0x188] sm:$0xff] %v869_v31  ;;  %v2622_v1 = vsub.f32 %v2620_v40, %v2621_v6  ;;  %945 = vst [vmem:[#allocation5 + $0x190] sm:$0xff] %v870_v44  ;;  %v432_v43 = vmul.f32 0.0026041667, %v370_v25  ;;  %v2630_v31 = vld [vmem:[#allocation27_spill] sm:$0xff] }
 0x130   :  { %v692_v24 = vmul.f32 %v1026_v29, %v2619_v39  ;;  %v782_v50 = vmul.f32 %v2518_v8, %v690_v20  ;;  %v866_v10 = vadd.f32 %v1565_v17, %v774_v5  ;;  %940 = vst [vmem:[#allocation5 + $0x168] sm:$0xff] %v865_v54  ;;  %v2623_v29 = vld [vmem:[#allocation47_spill] sm:$0xff]  ;;  %v2626_v57 = vsub.f32 %v2625_v11, %v2621_v6  ;;  %v1041_v20 = vld [vmem:[#allocation2 + $0x1e0] sm:$0xff]  ;;  %v1030_v54 = vpop.eup %1029  ;;  %v2631_v39 = vld [vmem:[#allocation17_spill] sm:$0xff] }
 0x131   :  { %v867_v58 = vadd.f32 %v2520_v32, %v775_v45  ;;  %v783_v60 = vmul.f32 %v1555_v63, %v691_v30  ;;  %v687_v15 = vmul.f32 %v1028_v33, %v2622_v1  ;;  %v2624_v52 = vsub.f32 %v2623_v29, %v2621_v6  ;;  %v1042_v45 = vld [vmem:[#allocation2 + $0x1e8] sm:$0xff]  ;;  %v1043_v30 = vld [vmem:[#allocation2 + $0x1f0] sm:$0xff]  ;;  %v1032_v40 = vpop.eup %1031 }
 0x132   :  { %v784_v38 = vmul.f32 %v1557_v13, %v692_v24  ;;  %v874_v37 = vadd.f32 %v2519_v3, %v782_v50  ;;  %v689_v53 = vmul.f32 %v1028_v33, %v2626_v57  ;;  %941 = vst [vmem:[#allocation5 + $0x170] sm:$0xff] %v866_v10  ;;  %v483_v4 = vsub.f32 %v433_v12, %v2627_v16  ;;  %v1045_v50 = vld [vmem:[#allocation2 + $0x1d0] sm:$0xff] }
 0x133   :  { %v688_v36 = vmul.f32 %v1028_v33, %v2624_v52  ;;  %942 = vst [vmem:[#allocation5 + $0x178] sm:$0xff] %v867_v58  ;;  %v875_v18 = vadd.f32 %v1565_v17, %v783_v60  ;;  %v779_v14 = vmul.f32 %v2518_v8, %v687_v15  ;;  %v435_v41 = vmul.f32 0.0026041667, %v385_v9  ;;  %v1046_v58 = vld [vmem:[#allocation2 + $0x1d8] sm:$0xff] }
 0x134   :  { %v876_v47 = vadd.f32 %v2520_v32, %v784_v38  ;;  %949 = vst [vmem:[#allocation5 + $0x1b0] sm:$0xff] %v874_v37  ;;  %v781_v21 = vmul.f32 %v1557_v13, %v689_v53  ;;  %v459_v62 = vmul.f32 %v2628_v26, %v2628_v26  ;;  %v434_v23 = vmul.f32 0.0026041667, %v378_v34 }
 0x135   :  { %v780_v28 = vmul.f32 %v1555_v63, %v688_v36  ;;  %950 = vst [vmem:[#allocation5 + $0x1b8] sm:$0xff] %v875_v18  ;;  %v871_v33 = vadd.f32 %v2519_v3, %v779_v14  ;;  %v508_v35 = vmax.f32 %v483_v4, 0.0  ;;  %v482_v51 = vsub.f32 %v432_v43, %v2629_v56  ;;  %v1048_v4 = vld [vmem:[#allocation2 + $0x218] sm:$0xff]  ;;  %v1051_v56 = vld [vmem:[#allocation2 + $0x200] sm:$0xff] }
 0x136   :  { %951 = vst [vmem:[#allocation5 + $0x1c0] sm:$0xff] %v876_v47  ;;  %v873_v22 = vadd.f32 %v2520_v32, %v781_v21  ;;  %v485_v61 = vsub.f32 %v435_v41, %v2022_v27  ;;  %v484_v19 = vsub.f32 %v434_v23, %v459_v62  ;;  %v621_v5 = vsub.f32 %v1041_v20, %v2630_v31  ;;  %v1047_v21 = vld [vmem:[#allocation2 + $0x210] sm:$0xff]  ;;  %v1049_v41 = vld [vmem:[#allocation2 + $0x220] sm:$0xff]  ;;  %v1050_v62 = vld [vmem:[#allocation2 + $0x1f8] sm:$0xff] }
 0x137   :  { %v872_v48 = vadd.f32 %v1565_v17, %v780_v28  ;;  %946 = vst [vmem:[#allocation5 + $0x198] sm:$0xff] %v871_v33  ;;  %v533_v25 = vadd.f32 1e-06, %v508_v35  ;;  %v507_v0 = vmax.f32 %v482_v51, 0.0  ;;  %v622_v46 = vsub.f32 %v1042_v45, %v2630_v31  ;;  %v2632_v33 = vld [vmem:[#allocation52_spill] sm:$0xff]  ;;  %v2633_v23 = vld [vmem:[#allocation18_spill] sm:$0xff] }
 0x138   :  { %948 = vst [vmem:[#allocation5 + $0x1a8] sm:$0xff] %v873_v22  ;;  %v510_v49 = vmax.f32 %v485_v61, 0.0  ;;  %v509_v7 = vmax.f32 %v484_v19, 0.0  ;;  %v623_v44 = vsub.f32 %v1043_v30, %v2630_v31  ;;  %v618_v24 = vsub.f32 %v1044_v2, %v2631_v39  ;;  %v1052_v61 = vld [vmem:[#allocation2 + $0x208] sm:$0xff] }
 0x139   :  { %947 = vst [vmem:[#allocation5 + $0x1a0] sm:$0xff] %v872_v48  ;;  %1033 = vrsqrt.f32 %v533_v25  ;;  %v532_v42 = vadd.f32 1e-06, %v507_v0  ;;  %v619_v10 = vsub.f32 %v1045_v50, %v2631_v39  ;;  %v620_v60 = vsub.f32 %v1046_v58, %v2631_v39  ;;  %v1053_v25 = vld [vmem:[#allocation2 + $0x228] sm:$0xff] }
 0x13a   :  { %v535_v59 = vadd.f32 1e-06, %v510_v49  ;;  %v534_v27 = vadd.f32 1e-06, %v509_v7  ;;  %v696_v6 = vmul.f32 %v1030_v54, %v621_v5  ;;  %v697_v1 = vmul.f32 %v1030_v54, %v622_v46  ;;  %v1054_v49 = vld [vmem:[#allocation2 + $0x230] sm:$0xff]  ;;  %v1055_v5 = vld [vmem:[#allocation2 + $0x238] sm:$0xff] }
 0x13b   :  { %1035 = vrsqrt.f32 %v532_v42  ;;  %v698_v15 = vmul.f32 %v1030_v54, %v623_v44  ;;  %v693_v38 = vmul.f32 %v1032_v40, %v618_v24  ;;  %v694_v37 = vmul.f32 %v1032_v40, %v619_v10  ;;  %v1056_v46 = vld [vmem:[#allocation2 + $0x240] sm:$0xf]  ;;  %v1057_v44 = vld [vmem:[#allocation2 + $0x248] sm:$0xf]  ;;  %v1058_v54 = vld [vmem:[#allocation2 + $0x250] sm:$0xf] }
 0x13c   :  { %1037 = vrsqrt.f32 %v535_v59  ;;  %v695_v29 = vmul.f32 %v1032_v40, %v620_v60  ;;  %v788_v52 = vmul.f32 %v2518_v8, %v696_v6  ;;  %v789_v36 = vmul.f32 %v1555_v63, %v697_v1 }
 0x13d   :  { %1039 = vrsqrt.f32 %v534_v27  ;;  %v790_v11 = vmul.f32 %v1557_v13, %v698_v15  ;;  %v785_v57 = vmul.f32 %v2518_v8, %v693_v38  ;;  %v786_v53 = vmul.f32 %v1555_v63, %v694_v37 }
 0x13e   :  { %v787_v9 = vmul.f32 %v1557_v13, %v695_v29  ;;  %v880_v18 = vadd.f32 %v2519_v3, %v788_v52  ;;  %v881_v14 = vadd.f32 %v1565_v17, %v789_v36  ;;  %v627_v16 = vsub.f32 %v1047_v21, %v2632_v33 }
 0x13f   :  { %v882_v12 = vadd.f32 %v2520_v32, %v790_v11  ;;  %v877_v34 = vadd.f32 %v2519_v3, %v785_v57  ;;  %v878_v47 = vadd.f32 %v1565_v17, %v786_v53  ;;  %v628_v43 = vsub.f32 %v1048_v4, %v2632_v33 }
 0x140   :  { %v879_v28 = vadd.f32 %v2520_v32, %v787_v9  ;;  %v629_v48 = vsub.f32 %v1049_v41, %v2632_v33  ;;  %955 = vst [vmem:[#allocation5 + $0x1e0] sm:$0xff] %v880_v18  ;;  %956 = vst [vmem:[#allocation5 + $0x1e8] sm:$0xff] %v881_v14  ;;  %v624_v35 = vsub.f32 %v1050_v62, %v2633_v23 }
 0x141   :  { %957 = vst [vmem:[#allocation5 + $0x1f0] sm:$0xff] %v882_v12  ;;  %v625_v51 = vsub.f32 %v1051_v56, %v2633_v23  ;;  %v626_v19 = vsub.f32 %v1052_v61, %v2633_v23  ;;  %v630_v0 = vsub.f32 %v1053_v25, %v2628_v26  ;;  %952 = vst [vmem:[#allocation5 + $0x1c8] sm:$0xff] %v877_v34 }
 0x142   :  { %953 = vst [vmem:[#allocation5 + $0x1d0] sm:$0xff] %v878_v47  ;;  %954 = vst [vmem:[#allocation5 + $0x1d8] sm:$0xff] %v879_v28  ;;  %v631_v7 = vsub.f32 %v1054_v49, %v2628_v26  ;;  %v632_v45 = vsub.f32 %v1055_v5, %v2628_v26  ;;  %v633_v30 = vsub.f32 %v1056_v46, %v1847_v55 }
 0x143   :  { %v1034_v22 = vpop.eup %1033  ;;  %v634_v27 = vsub.f32 %v1057_v44, %v1847_v55  ;;  %v635_v2 = vsub.f32 %v1058_v54, %v1847_v55 }
 0x144   :  { %v702_v42 = vmul.f32 %v1034_v22, %v627_v16  ;;  %v703_v59 = vmul.f32 %v1034_v22, %v628_v43  ;;  %v704_v20 = vmul.f32 %v1034_v22, %v629_v48 }
 0x145   :  { %v1036_v31 = vpop.eup %1035 }
 0x146   :  { %v1038_v39 = vpop.eup %1037  ;;  %v794_v24 = vmul.f32 %v2518_v8, %v702_v42  ;;  %v795_v50 = vmul.f32 %v1555_v63, %v703_v59  ;;  %v796_v10 = vmul.f32 %v1557_v13, %v704_v20  ;;  %v699_v58 = vmul.f32 %v1036_v31, %v624_v35 }
 0x147   :  { %v1040_v60 = vpop.eup %1039  ;;  %v700_v40 = vmul.f32 %v1036_v31, %v625_v51  ;;  %v701_v26 = vmul.f32 %v1036_v31, %v626_v19  ;;  %v708_v6 = vmul.f32 %v1038_v39, %v633_v30  ;;  %v709_v1 = vmul.f32 %v1038_v39, %v634_v27 }
 0x148   :  { %v886_v15 = vadd.f32 %v2519_v3, %v794_v24  ;;  %v887_v38 = vadd.f32 %v1565_v17, %v795_v50  ;;  %v888_v37 = vadd.f32 %v2520_v32, %v796_v10  ;;  %v791_v55 = vmul.f32 %v2518_v8, %v699_v58 }
 0x149   :  { %v792_v29 = vmul.f32 %v1555_v63, %v700_v40  ;;  %v793_v52 = vmul.f32 %v1557_v13, %v701_v26  ;;  %v710_v36 = vmul.f32 %v1038_v39, %v635_v2  ;;  %v800_v11 = vmul.f32 %v2518_v8, %v708_v6 }
 0x14a   :  { %961 = vst [vmem:[#allocation5 + $0x210] sm:$0xff] %v886_v15  ;;  %962 = vst [vmem:[#allocation5 + $0x218] sm:$0xff] %v887_v38  ;;  %v883_v57 = vadd.f32 %v2519_v3, %v791_v55  ;;  %v801_v53 = vmul.f32 %v1555_v63, %v709_v1  ;;  %v705_v9 = vmul.f32 %v1040_v60, %v630_v0 }
 0x14b   :  { %963 = vst [vmem:[#allocation5 + $0x220] sm:$0xff] %v888_v37  ;;  %v706_v18 = vmul.f32 %v1040_v60, %v631_v7  ;;  %v884_v14 = vadd.f32 %v1565_v17, %v792_v29  ;;  %v885_v12 = vadd.f32 %v2520_v32, %v793_v52  ;;  %v802_v34 = vmul.f32 %v1557_v13, %v710_v36 }
 0x14c   :  { %v892_v47 = vadd.f32 %v2519_v3, %v800_v11  ;;  %958 = vst [vmem:[#allocation5 + $0x1f8] sm:$0xff] %v883_v57  ;;  %v893_v28 = vadd.f32 %v1565_v17, %v801_v53  ;;  %v707_v21 = vmul.f32 %v1040_v60, %v632_v45  ;;  %v797_v33 = vmul.f32 %v2518_v8, %v705_v9 }
 0x14d   :  { %v798_v16 = vmul.f32 %v1555_v63, %v706_v18  ;;  %959 = vst [vmem:[#allocation5 + $0x200] sm:$0xff] %v884_v14  ;;  %960 = vst [vmem:[#allocation5 + $0x208] sm:$0xff] %v885_v12  ;;  %v894_v4 = vadd.f32 %v2520_v32, %v802_v34 }
 0x14e   :  { %967 = vst [vmem:[#allocation5 + $0x240] sm:$0xf] %v892_v47  ;;  %968 = vst [vmem:[#allocation5 + $0x248] sm:$0xf] %v893_v28  ;;  %v799_v43 = vmul.f32 %v1557_v13, %v707_v21  ;;  %v889_v41 = vadd.f32 %v2519_v3, %v797_v33 }
 0x14f   :  { %v890_v48 = vadd.f32 %v1565_v17, %v798_v16  ;;  %969 = vst [vmem:[#allocation5 + $0x250] sm:$0xf] %v894_v4 }
 0x150   :  { %v891_v22 = vadd.f32 %v2520_v32, %v799_v43  ;;  %964 = vst [vmem:[#allocation5 + $0x228] sm:$0xff] %v889_v41 }
 0x151   :  { %965 = vst [vmem:[#allocation5 + $0x230] sm:$0xff] %v890_v48 }
 0x152   :  { %966 = vst [vmem:[#allocation5 + $0x238] sm:$0xff] %v891_v22 }
 0x153   :  { %1092 = shalt.err (!%p1089_p12)
}
 0x154   :  { %s1093_s5 = scalar_lea.hbm %s2263_s3, 9600 }
 0x155   :  { %p1094_p13 = scmp.ne.s32.totalorder %s2263_s3, %s1093_s5  ;;  %p1097_p0 = scmp.lt.u32.totalorder %s1093_s5, %s2263_s3 }
 0x157   :  { %p1099_p1 = pnand %p1097_p0, %p1094_p13 }
 0x159   :  { %1102 = shalt.err (!%p1099_p1)
}
 0x15a   :  { %981 = dma.vmem_to_hbm [thread:$0]  %s976_s2, 9600, %s2263_s3, [#allocation4], %s1108_s22, %s1108_s22, %s1109_s23  }
 0x15b   :  { %1105 = dma.done.wait [#allocation4], 9600  }
 0x15c   :  { %1106 = vsyncadd [#allocation4], 4294957696 }
 0x15d   :  { %985 = vsyncpa [#allocation3], 1 }
 0x15e   :  { %986 = vsyncpa [#allocation4], 1 }

</bundles_post_ra>
